<compile_context>
chip_gen: v7x
topology: tpu7x:2x2x1
jax: 0.10.0
libtpu: 0.0.40
codegen_flags: <defaults>
</compile_context>

<pallas_src>
import functools

import jax
import jax.numpy as jnp
from jax.experimental import pallas as pl
from jax.experimental.pallas import tpu as pltpu

D_MODEL = 32
N_HEADS = 4
D_HEAD = D_MODEL // N_HEADS
D_FF = 64
EPS = 1e-6          # LayerNormalization eps from the tutorial reference
NEG_INF = 1e9
MXU_DTYPE = jnp.bfloat16  # MXU operand dtype (f32 accumulation via preferred_element_type)


def _decoder_block_kernel(
    # activations / masks
    x_ref, enc_ref, tgt_bias_ref, src_bias_ref,
    # packed parameters
    w_sqkv_ref, b_sqkv_ref, w_so_ref,
    w_cq_ref, w_ckv_ref, b_cqkv_ref, w_co_ref, b_o_ref,
    w_ff1_ref, w_ff2_ref, b_ff_ref,
    ln_a_ref, ln_b_ref,
    # output
    out_ref,
    *, b_blk, s_dec, s_enc,
):
    D, H, DK, F = D_MODEL, N_HEADS, D_HEAD, D_FF
    scale = 1.0 / (DK ** 0.5)

    x = x_ref[...]        # (b_blk*s_dec, D) f32 (rows already flattened in the wrapper)
    enc = enc_ref[...]    # (b_blk*s_enc, D) f32

    ln_a = ln_a_ref[...]      # (3, D)  LayerNorm scales   [self, cross, ffn]
    ln_b = ln_b_ref[...]      # (3, D)  LayerNorm biases
    b_o = b_o_ref[...]        # (1, 2D) [self-out bias | cross-out bias]
    b_cqkv = b_cqkv_ref[...]  # (1, 3D) [cross-q bias | cross-k bias | cross-v bias]
    b_ff = b_ff_ref[...]      # (1, F+D) [ff1 bias | ff2 bias]

    def layernorm(v, i):
        # Matches the tutorial LayerNormalization: unbiased std + eps added to std.
        mean = jnp.mean(v, axis=-1, keepdims=True)
        var = jnp.sum((v - mean) ** 2, axis=-1, keepdims=True) * (1.0 / (D - 1))
        inv_std = pl.reciprocal(jnp.sqrt(var) + EPS, approx=True)
        return ln_a[i:i + 1, :] * (v - mean) * inv_std + ln_b[i:i + 1, :]

    def mm(a, w, bias=None):
        out = jnp.dot(a.astype(MXU_DTYPE), w, preferred_element_type=jnp.float32)
        return out if bias is None else out + bias

    def split_heads(t, s):
        # (b_blk*s, H*DK) -> (H*b_blk, s, DK): lane-slice per head, stack on leading axis.
        parts = [t[:, h * DK:(h + 1) * DK].reshape(1, b_blk, s, DK) for h in range(H)]
        return jnp.concatenate(parts, axis=0).reshape(H * b_blk, s, DK)

    def merge_heads(t, s):
        # (H*b_blk, s, DK) -> (b_blk*s, H*DK)
        t4 = t.reshape(H, b_blk, s, DK)
        return jnp.concatenate([t4[h].reshape(b_blk * s, DK) for h in range(H)], axis=-1)

    def attention(q, k, v, bias, s_q, s_k):
        # q: (b_blk*s_q, D); k, v: (b_blk*s_k, D); bias: (b_blk, s_q or 1, s_k) additive.
        qh = split_heads(q, s_q).astype(MXU_DTYPE)
        kh = split_heads(k, s_k).astype(MXU_DTYPE)
        vh = split_heads(v, s_k).astype(MXU_DTYPE)
        s = jnp.einsum("bqd,bkd->bqk", qh, kh,
                       preferred_element_type=jnp.float32) * scale   # (H*b_blk, s_q, s_k)
        s = (s.reshape(H, b_blk, s_q, s_k) + bias[None]).reshape(H * b_blk, s_q, s_k)
        s_max = jnp.max(s, axis=-1, keepdims=True)
        p = jnp.exp(s - s_max)
        p = p * pl.reciprocal(jnp.sum(p, axis=-1, keepdims=True), approx=True)
        ctx = jnp.einsum("bqk,bkd->bqd", p.astype(MXU_DTYPE), vh,
                         preferred_element_type=jnp.float32)         # (H*b_blk, s_q, DK)
        return merge_heads(ctx, s_q)                                  # (b_blk*s_q, D)

    # ---- sublayer 1: pre-norm -> masked multi-head self-attention -> residual --------
    xn = layernorm(x, 0)
    qkv = mm(xn, w_sqkv_ref[...], b_sqkv_ref[...])                    # fused QKV, (N, 3D)
    ctx = attention(qkv[:, :D], qkv[:, D:2 * D], qkv[:, 2 * D:],
                    tgt_bias_ref[...], s_dec, s_dec)
    x1 = x + mm(ctx, w_so_ref[...], b_o[:, :D])

    # ---- sublayer 2: pre-norm -> cross-attention (q: decoder, k/v: encoder) -> residual
    xn2 = layernorm(x1, 1)
    q2 = mm(xn2, w_cq_ref[...], b_cqkv[:, :D])
    kv2 = mm(enc, w_ckv_ref[...], b_cqkv[:, D:])                      # fused K/V, (N, 2D)
    ctx2 = attention(q2, kv2[:, :D], kv2[:, D:],
                     src_bias_ref[...], s_dec, s_enc)
    x2 = x1 + mm(ctx2, w_co_ref[...], b_o[:, D:])

    # ---- sublayer 3: pre-norm -> feed-forward -> residual -----------------------------
    xn3 = layernorm(x2, 2)
    h1 = jnp.maximum(mm(xn3, w_ff1_ref[...], b_ff[:, :F]), 0.0)
    ff = mm(h1, w_ff2_ref[...], b_ff[:, F:])

    # TODO(synk): dropout (attention / residual / FFN) omitted — identity in eval mode.
    out_ref[...] = x2 + ff


def pack_params(p):
    """Fuse / pack the raw (PyTorch-style) parameters for the kernel."""
    bf = MXU_DTYPE
    w_sqkv = jnp.concatenate([p["wq_s"], p["wk_s"], p["wv_s"]], axis=1).astype(bf)  # (D,3D)
    b_sqkv = jnp.concatenate([p["bq_s"], p["bk_s"], p["bv_s"]])[None, :]            # (1,3D)
    w_so = p["wo_s"].astype(bf)                                                     # (D,D)
    w_cq = p["wq_c"].astype(bf)                                                     # (D,D)
    w_ckv = jnp.concatenate([p["wk_c"], p["wv_c"]], axis=1).astype(bf)              # (D,2D)
    b_cqkv = jnp.concatenate([p["bq_c"], p["bk_c"], p["bv_c"]])[None, :]            # (1,3D)
    w_co = p["wo_c"].astype(bf)                                                     # (D,D)
    b_o = jnp.concatenate([p["bo_s"], p["bo_c"]])[None, :]                          # (1,2D)
    w_ff1 = p["w1"].astype(bf)                                                      # (D,F)
    w_ff2 = p["w2"].astype(bf)                                                      # (F,D)
    b_ff = jnp.concatenate([p["b1"], p["b2"]])[None, :]                             # (1,F+D)
    ln_a = jnp.stack([p["a1"], p["a2"], p["a3"]], axis=0)                           # (3,D)
    ln_b = jnp.stack([p["g1"], p["g2"], p["g3"]], axis=0)                           # (3,D)
    return (w_sqkv, b_sqkv, w_so, w_cq, w_ckv, b_cqkv, w_co, b_o,
            w_ff1, w_ff2, b_ff, ln_a, ln_b)


def decoder_block(x, encoder_output, src_mask, tgt_mask, params, b_blk=None):
    B, S, D = x.shape
    S_enc = encoder_output.shape[1]
    assert D == D_MODEL
    if b_blk is None:
        # Whole batch in one program: max sublane fill, minimum grid overhead (v5e/v6e).
        # NOTE: on v7x (2 TensorCores) pass b_blk = B // 2 for large B so both cores work.
        b_blk = B
    assert B % b_blk == 0
    grid = (B // b_blk,)

    packed = pack_params(params)

    # Flatten rows in the wrapper so the kernel sees contiguous (rows, D) slabs and the
    # dense layers run on all b_blk*S rows at once.
    x_flat = x.reshape(B * S, D)
    enc_flat = encoder_output.reshape(B * S_enc, D)

    # Additive mask biases precomputed once in the wrapper (0 keep / -1e9 drop).
    tgt_bias = (tgt_mask.reshape(B, S, S).astype(jnp.float32) - 1.0) * NEG_INF
    src_bias = (src_mask.reshape(B, 1, S_enc).astype(jnp.float32) - 1.0) * NEG_INF

    in_specs = [
        pl.BlockSpec((b_blk * S, D), lambda i: (i, 0)),        # x rows
        pl.BlockSpec((b_blk * S_enc, D), lambda i: (i, 0)),    # encoder-output rows
        pl.BlockSpec((b_blk, S, S), lambda i: (i, 0, 0)),      # tgt additive mask
        pl.BlockSpec((b_blk, 1, S_enc), lambda i: (i, 0, 0)),  # src additive mask
    ] + [pl.BlockSpec(p.shape, lambda i: (0, 0)) for p in packed]

    kernel = functools.partial(_decoder_block_kernel, b_blk=b_blk, s_dec=S, s_enc=S_enc)

    out = pl.pallas_call(
        kernel,
        out_shape=jax.ShapeDtypeStruct((B * S, D), jnp.float32),
        grid=grid,
        in_specs=in_specs,
        out_specs=pl.BlockSpec((b_blk * S, D), lambda i: (i, 0)),
        compiler_params=pltpu.CompilerParams(dimension_semantics=("parallel",)),
    )(x_flat, enc_flat, tgt_bias, src_bias, *packed)
    return out.reshape(B, S, D)


def ref_decoder_block(x, enc, src_mask, tgt_mask, p):
    """Pure-JAX f32 reference mirroring the PyTorch DecoderBlock forward."""
    B, S, D = x.shape
    dk = D // N_HEADS

    def layernorm(v, a, g):
        mean = jnp.mean(v, -1, keepdims=True)
        var = jnp.sum((v - mean) ** 2, -1, keepdims=True) / (D - 1)
        return a * (v - mean) / (jnp.sqrt(var) + EPS) + g

    def mha(q_in, kv_in, wq, bq, wk, bk, wv, bv, wo, bo, mask):
        Bq, Sq, _ = q_in.shape
        Sk = kv_in.shape[1]
        q = (q_in @ wq + bq).reshape(Bq, Sq, N_HEADS, dk).transpose(0, 2, 1, 3)
        k = (kv_in @ wk + bk).reshape(Bq, Sk, N_HEADS, dk).transpose(0, 2, 1, 3)
        v = (kv_in @ wv + bv).reshape(Bq, Sk, N_HEADS, dk).transpose(0, 2, 1, 3)
        s = jnp.einsum("bhqd,bhkd->bhqk", q, k) / jnp.sqrt(jnp.float32(dk))
        s = jnp.where(mask == 0, -1e9, s)
        a = jax.nn.softmax(s, axis=-1)
        o = jnp.einsum("bhqk,bhkd->bhqd", a, v).transpose(0, 2, 1, 3).reshape(Bq, Sq, D)
        return o @ wo + bo

    xn = layernorm(x, p["a1"], p["g1"])
    x1 = x + mha(xn, xn, p["wq_s"], p["bq_s"], p["wk_s"], p["bk_s"],
                 p["wv_s"], p["bv_s"], p["wo_s"], p["bo_s"], tgt_mask)
    xn2 = layernorm(x1, p["a2"], p["g2"])
    x2 = x1 + mha(xn2, enc, p["wq_c"], p["bq_c"], p["wk_c"], p["bk_c"],
                  p["wv_c"], p["bv_c"], p["wo_c"], p["bo_c"], src_mask)
    xn3 = layernorm(x2, p["a3"], p["g3"])
    ff = jnp.maximum(xn3 @ p["w1"] + p["b1"], 0.0) @ p["w2"] + p["b2"]
    return x2 + ff


def make_params(key, d_model=D_MODEL, d_ff=D_FF):
    ks = iter(jax.random.split(key, 32))

    def w(shape, scale=0.02):
        return scale * jax.random.normal(next(ks), shape, jnp.float32)

    p = {}
    for name in ("s", "c"):  # self-attention / cross-attention
        p[f"wq_{name}"] = w((d_model, d_model)); p[f"bq_{name}"] = w((d_model,), 0.01)
        p[f"wk_{name}"] = w((d_model, d_model)); p[f"bk_{name}"] = w((d_model,), 0.01)
        p[f"wv_{name}"] = w((d_model, d_model)); p[f"bv_{name}"] = w((d_model,), 0.01)
        p[f"wo_{name}"] = w((d_model, d_model)); p[f"bo_{name}"] = w((d_model,), 0.01)
    p["w1"] = w((d_model, d_ff)); p["b1"] = w((d_ff,), 0.01)
    p["w2"] = w((d_ff, d_model)); p["b2"] = w((d_model,), 0.01)
    for i in (1, 2, 3):
        p[f"a{i}"] = 1.0 + w((d_model,), 0.1)   # LayerNorm alpha (scale)
        p[f"g{i}"] = w((d_model,), 0.1)         # LayerNorm bias
    return p


if __name__ == "__main__":
    key = jax.random.PRNGKey(0)
    k_x, k_e, k_p = jax.random.split(key, 3)

    B, S = 2, 8
    x = jax.random.normal(k_x, (B, S, D_MODEL), jnp.float32)
    enc_out = jax.random.normal(k_e, (B, S, D_MODEL), jnp.float32)

    # src_mask: (B, 1, 1, S) encoder padding mask; second sequence pads the last 3 keys.
    lengths = jnp.array([S, 5])
    pad = (jnp.arange(S)[None, :] < lengths[:, None]).astype(jnp.float32)   # (B, S)
    src_mask = pad.reshape(B, 1, 1, S)
    # tgt_mask: (B, 1, S, S) causal mask combined with key padding.
    causal = jnp.tril(jnp.ones((S, S), jnp.float32))
    tgt_mask = (causal[None, :, :] * pad[:, None, :]).reshape(B, 1, S, S)

    params = make_params(k_p)

    out = decoder_block(x, enc_out, src_mask, tgt_mask, params)
    out = jax.block_until_ready(out)

    ref = ref_decoder_block(x, enc_out, src_mask, tgt_mask, params)
    assert out.shape == (B, S, D_MODEL)
    err = float(jnp.max(jnp.abs(out - ref)))
    # Tolerance accounts for bf16 MXU operands + approx-reciprocal (EUP) in softmax/LN.
    assert jnp.allclose(out, ref, rtol=5e-3, atol=5e-3), f"max abs err = {err}"
    print("KERNEL_OK")
</pallas_src>

<mosaic_0001>
module attributes {stable_mosaic.version = 11 : i64} {
  func.func @_decoder_block_kernel(%arg0: i32, %arg1: memref<16x32xf32, #tpu.memory_space<vmem>>, %arg2: memref<16x32xf32, #tpu.memory_space<vmem>>, %arg3: memref<2x8x8xf32, #tpu.memory_space<vmem>>, %arg4: memref<2x1x8xf32, #tpu.memory_space<vmem>>, %arg5: memref<32x96xbf16, #tpu.memory_space<vmem>>, %arg6: memref<1x96xf32, #tpu.memory_space<vmem>>, %arg7: memref<32x32xbf16, #tpu.memory_space<vmem>>, %arg8: memref<32x32xbf16, #tpu.memory_space<vmem>>, %arg9: memref<32x64xbf16, #tpu.memory_space<vmem>>, %arg10: memref<1x96xf32, #tpu.memory_space<vmem>>, %arg11: memref<32x32xbf16, #tpu.memory_space<vmem>>, %arg12: memref<1x64xf32, #tpu.memory_space<vmem>>, %arg13: memref<32x64xbf16, #tpu.memory_space<vmem>>, %arg14: memref<64x32xbf16, #tpu.memory_space<vmem>>, %arg15: memref<1x96xf32, #tpu.memory_space<vmem>>, %arg16: memref<3x32xf32, #tpu.memory_space<vmem>>, %arg17: memref<3x32xf32, #tpu.memory_space<vmem>>, %arg18: memref<16x32xf32, #tpu.memory_space<vmem>>) attributes {dimension_semantics = [#tpu.dimension_semantics<parallel>], iteration_bounds = array<i64: 1>, scalar_prefetch = 0 : i64, scratch_operands = 0 : i64, tpu.core_type = #tpu.core_type<tc>, window_params = [{transform_indices = @transform_0, window_bounds = array<i64: 16, 32>}, {transform_indices = @transform_1, window_bounds = array<i64: 16, 32>}, {transform_indices = @transform_2, window_bounds = array<i64: 2, 8, 8>}, {transform_indices = @transform_3, window_bounds = array<i64: 2, 1, 8>}, {pipeline_mode = #tpu.pipeline_mode<synchronous>, transform_indices = @transform_4, window_bounds = array<i64: 32, 96>}, {pipeline_mode = #tpu.pipeline_mode<synchronous>, transform_indices = @transform_5, window_bounds = array<i64: 1, 96>}, {pipeline_mode = #tpu.pipeline_mode<synchronous>, transform_indices = @transform_6, window_bounds = array<i64: 32, 32>}, {pipeline_mode = #tpu.pipeline_mode<synchronous>, transform_indices = @transform_7, window_bounds = array<i64: 32, 32>}, {pipeline_mode = #tpu.pipeline_mode<synchronous>, transform_indices = @transform_8, window_bounds = array<i64: 32, 64>}, {pipeline_mode = #tpu.pipeline_mode<synchronous>, transform_indices = @transform_9, window_bounds = array<i64: 1, 96>}, {pipeline_mode = #tpu.pipeline_mode<synchronous>, transform_indices = @transform_10, window_bounds = array<i64: 32, 32>}, {pipeline_mode = #tpu.pipeline_mode<synchronous>, transform_indices = @transform_11, window_bounds = array<i64: 1, 64>}, {pipeline_mode = #tpu.pipeline_mode<synchronous>, transform_indices = @transform_12, window_bounds = array<i64: 32, 64>}, {pipeline_mode = #tpu.pipeline_mode<synchronous>, transform_indices = @transform_13, window_bounds = array<i64: 64, 32>}, {pipeline_mode = #tpu.pipeline_mode<synchronous>, transform_indices = @transform_14, window_bounds = array<i64: 1, 96>}, {pipeline_mode = #tpu.pipeline_mode<synchronous>, transform_indices = @transform_15, window_bounds = array<i64: 3, 32>}, {pipeline_mode = #tpu.pipeline_mode<synchronous>, transform_indices = @transform_16, window_bounds = array<i64: 3, 32>}, {transform_indices = @transform_17, window_bounds = array<i64: 16, 32>}]} {
    %c0 = arith.constant 0 : index
    %c0_0 = arith.constant 0 : index
    %0 = vector.load %arg1[%c0, %c0_0] : memref<16x32xf32, #tpu.memory_space<vmem>>, vector<16x32xf32>
    %c0_1 = arith.constant 0 : index
    %c0_2 = arith.constant 0 : index
    %1 = vector.load %arg2[%c0_1, %c0_2] : memref<16x32xf32, #tpu.memory_space<vmem>>, vector<16x32xf32>
    %c0_3 = arith.constant 0 : index
    %c0_4 = arith.constant 0 : index
    %2 = vector.load %arg16[%c0_3, %c0_4] : memref<3x32xf32, #tpu.memory_space<vmem>>, vector<3x32xf32>
    %c0_5 = arith.constant 0 : index
    %c0_6 = arith.constant 0 : index
    %3 = vector.load %arg17[%c0_5, %c0_6] : memref<3x32xf32, #tpu.memory_space<vmem>>, vector<3x32xf32>
    %c0_7 = arith.constant 0 : index
    %c0_8 = arith.constant 0 : index
    %4 = vector.load %arg12[%c0_7, %c0_8] : memref<1x64xf32, #tpu.memory_space<vmem>>, vector<1x64xf32>
    %c0_9 = arith.constant 0 : index
    %c0_10 = arith.constant 0 : index
    %5 = vector.load %arg10[%c0_9, %c0_10] : memref<1x96xf32, #tpu.memory_space<vmem>>, vector<1x96xf32>
    %c0_11 = arith.constant 0 : index
    %c0_12 = arith.constant 0 : index
    %6 = vector.load %arg15[%c0_11, %c0_12] : memref<1x96xf32, #tpu.memory_space<vmem>>, vector<1x96xf32>
    %cst = arith.constant dense<0.000000e+00> : vector<16xf32>
    %7 = vector.multi_reduction <add>, %0, %cst [1] : vector<16x32xf32> to vector<16xf32>
    %8 = vector.shape_cast %7 : vector<16xf32> to vector<16x1xf32>
    %cst_13 = arith.constant 3.200000e+01 : f32
    %9 = vector.broadcast %cst_13 : f32 to vector<16x1xf32>
    %10 = arith.divf %8, %9 : vector<16x1xf32>
    %11 = vector.broadcast %10 : vector<16x1xf32> to vector<16x32xf32>
    %12 = arith.subf %0, %11 : vector<16x32xf32>
    %13 = arith.mulf %12, %12 : vector<16x32xf32>
    %cst_14 = arith.constant dense<0.000000e+00> : vector<16xf32>
    %14 = vector.multi_reduction <add>, %13, %cst_14 [1] : vector<16x32xf32> to vector<16xf32>
    %15 = vector.shape_cast %14 : vector<16xf32> to vector<16x1xf32>
    %cst_15 = arith.constant 0.0322580636 : f32
    %16 = vector.broadcast %cst_15 : f32 to vector<16x1xf32>
    %17 = arith.mulf %15, %16 : vector<16x1xf32>
    %18 = math.sqrt %17 : vector<16x1xf32>
    %cst_16 = arith.constant 9.99999997E-7 : f32
    %19 = vector.broadcast %cst_16 : f32 to vector<16x1xf32>
    %20 = arith.addf %18, %19 : vector<16x1xf32>
    %21 = tpu.reciprocal %20 {approx = true} : vector<16x1xf32> -> vector<16x1xf32>
    %22 = vector.extract_strided_slice %2 {offsets = [0, 0], sizes = [1, 32], strides = [1, 1]} : vector<3x32xf32> to vector<1x32xf32>
    %23 = vector.broadcast %10 : vector<16x1xf32> to vector<16x32xf32>
    %24 = arith.subf %0, %23 : vector<16x32xf32>
    %25 = vector.broadcast %22 : vector<1x32xf32> to vector<16x32xf32>
    %26 = arith.mulf %25, %24 : vector<16x32xf32>
    %27 = vector.broadcast %21 : vector<16x1xf32> to vector<16x32xf32>
    %28 = arith.mulf %26, %27 : vector<16x32xf32>
    %29 = vector.extract_strided_slice %3 {offsets = [0, 0], sizes = [1, 32], strides = [1, 1]} : vector<3x32xf32> to vector<1x32xf32>
    %30 = vector.broadcast %29 : vector<1x32xf32> to vector<16x32xf32>
    %31 = arith.addf %28, %30 : vector<16x32xf32>
    %c0_17 = arith.constant 0 : index
    %c0_18 = arith.constant 0 : index
    %32 = vector.load %arg5[%c0_17, %c0_18] : memref<32x96xbf16, #tpu.memory_space<vmem>>, vector<32x96xbf16>
    %c0_19 = arith.constant 0 : index
    %c0_20 = arith.constant 0 : index
    %33 = vector.load %arg6[%c0_19, %c0_20] : memref<1x96xf32, #tpu.memory_space<vmem>>, vector<1x96xf32>
    %34 = arith.truncf %31 : vector<16x32xf32> to vector<16x32xbf16>
    %cst_21 = arith.constant dense<0.000000e+00> : vector<16x96xf32>
    %35 = tpu.matmul %34, %32, %cst_21 {dimension_numbers = #tpu.dot_dimension_numbers<[1], [0], [0], [1], [0, 0, 1, 1], [], []>} : vector<16x32xbf16>, vector<32x96xbf16>, vector<16x96xf32> -> vector<16x96xf32>
    %36 = vector.broadcast %33 : vector<1x96xf32> to vector<16x96xf32>
    %37 = arith.addf %35, %36 : vector<16x96xf32>
    %38 = vector.extract_strided_slice %37 {offsets = [0, 0], sizes = [16, 32], strides = [1, 1]} : vector<16x96xf32> to vector<16x32xf32>
    %39 = vector.extract_strided_slice %37 {offsets = [0, 32], sizes = [16, 32], strides = [1, 1]} : vector<16x96xf32> to vector<16x32xf32>
    %40 = vector.extract_strided_slice %37 {offsets = [0, 64], sizes = [16, 32], strides = [1, 1]} : vector<16x96xf32> to vector<16x32xf32>
    %c0_22 = arith.constant 0 : index
    %c0_23 = arith.constant 0 : index
    %c0_24 = arith.constant 0 : index
    %41 = vector.load %arg3[%c0_22, %c0_23, %c0_24] : memref<2x8x8xf32, #tpu.memory_space<vmem>>, vector<2x8x8xf32>
    %42 = vector.extract_strided_slice %38 {offsets = [0, 0], sizes = [16, 8], strides = [1, 1]} : vector<16x32xf32> to vector<16x8xf32>
    %43 = vector.shape_cast %42 : vector<16x8xf32> to vector<1x2x8x8xf32>
    %44 = vector.extract_strided_slice %38 {offsets = [0, 8], sizes = [16, 8], strides = [1, 1]} : vector<16x32xf32> to vector<16x8xf32>
    %45 = vector.shape_cast %44 : vector<16x8xf32> to vector<1x2x8x8xf32>
    %46 = vector.extract_strided_slice %38 {offsets = [0, 16], sizes = [16, 8], strides = [1, 1]} : vector<16x32xf32> to vector<16x8xf32>
    %47 = vector.shape_cast %46 : vector<16x8xf32> to vector<1x2x8x8xf32>
    %48 = vector.extract_strided_slice %38 {offsets = [0, 24], sizes = [16, 8], strides = [1, 1]} : vector<16x32xf32> to vector<16x8xf32>
    %49 = vector.shape_cast %48 : vector<16x8xf32> to vector<1x2x8x8xf32>
    %50 = tpu.concatenate %43, %45, %47, %49 in 0 : vector<1x2x8x8xf32>, vector<1x2x8x8xf32>, vector<1x2x8x8xf32>, vector<1x2x8x8xf32> -> vector<4x2x8x8xf32>
    %51 = vector.shape_cast %50 : vector<4x2x8x8xf32> to vector<8x8x8xf32>
    %52 = arith.truncf %51 : vector<8x8x8xf32> to vector<8x8x8xbf16>
    %53 = vector.extract_strided_slice %39 {offsets = [0, 0], sizes = [16, 8], strides = [1, 1]} : vector<16x32xf32> to vector<16x8xf32>
    %54 = vector.shape_cast %53 : vector<16x8xf32> to vector<1x2x8x8xf32>
    %55 = vector.extract_strided_slice %39 {offsets = [0, 8], sizes = [16, 8], strides = [1, 1]} : vector<16x32xf32> to vector<16x8xf32>
    %56 = vector.shape_cast %55 : vector<16x8xf32> to vector<1x2x8x8xf32>
    %57 = vector.extract_strided_slice %39 {offsets = [0, 16], sizes = [16, 8], strides = [1, 1]} : vector<16x32xf32> to vector<16x8xf32>
    %58 = vector.shape_cast %57 : vector<16x8xf32> to vector<1x2x8x8xf32>
    %59 = vector.extract_strided_slice %39 {offsets = [0, 24], sizes = [16, 8], strides = [1, 1]} : vector<16x32xf32> to vector<16x8xf32>
    %60 = vector.shape_cast %59 : vector<16x8xf32> to vector<1x2x8x8xf32>
    %61 = tpu.concatenate %54, %56, %58, %60 in 0 : vector<1x2x8x8xf32>, vector<1x2x8x8xf32>, vector<1x2x8x8xf32>, vector<1x2x8x8xf32> -> vector<4x2x8x8xf32>
    %62 = vector.shape_cast %61 : vector<4x2x8x8xf32> to vector<8x8x8xf32>
    %63 = arith.truncf %62 : vector<8x8x8xf32> to vector<8x8x8xbf16>
    %64 = vector.extract_strided_slice %40 {offsets = [0, 0], sizes = [16, 8], strides = [1, 1]} : vector<16x32xf32> to vector<16x8xf32>
    %65 = vector.shape_cast %64 : vector<16x8xf32> to vector<1x2x8x8xf32>
    %66 = vector.extract_strided_slice %40 {offsets = [0, 8], sizes = [16, 8], strides = [1, 1]} : vector<16x32xf32> to vector<16x8xf32>
    %67 = vector.shape_cast %66 : vector<16x8xf32> to vector<1x2x8x8xf32>
    %68 = vector.extract_strided_slice %40 {offsets = [0, 16], sizes = [16, 8], strides = [1, 1]} : vector<16x32xf32> to vector<16x8xf32>
    %69 = vector.shape_cast %68 : vector<16x8xf32> to vector<1x2x8x8xf32>
    %70 = vector.extract_strided_slice %40 {offsets = [0, 24], sizes = [16, 8], strides = [1, 1]} : vector<16x32xf32> to vector<16x8xf32>
    %71 = vector.shape_cast %70 : vector<16x8xf32> to vector<1x2x8x8xf32>
    %72 = tpu.concatenate %65, %67, %69, %71 in 0 : vector<1x2x8x8xf32>, vector<1x2x8x8xf32>, vector<1x2x8x8xf32>, vector<1x2x8x8xf32> -> vector<4x2x8x8xf32>
    %73 = vector.shape_cast %72 : vector<4x2x8x8xf32> to vector<8x8x8xf32>
    %74 = arith.truncf %73 : vector<8x8x8xf32> to vector<8x8x8xbf16>
    "tpu.trace_start"() <{level = 10 : i32, message = "bqd,bkd->bqk"}> : () -> ()
    %cst_25 = arith.constant dense<0.000000e+00> : vector<8x8x8xf32>
    %75 = tpu.matmul %52, %63, %cst_25 {dimension_numbers = #tpu.dot_dimension_numbers<[2], [2], [1], [1], [0, 0, 0, 1, 1, 1], [0], [0]>} : vector<8x8x8xbf16>, vector<8x8x8xbf16>, vector<8x8x8xf32> -> vector<8x8x8xf32>
    "tpu.trace_stop"() : () -> ()
    %cst_26 = arith.constant 0.353553385 : f32
    %76 = vector.broadcast %cst_26 : f32 to vector<8x8x8xf32>
    %77 = arith.mulf %75, %76 : vector<8x8x8xf32>
    %78 = vector.shape_cast %77 : vector<8x8x8xf32> to vector<4x2x8x8xf32>
    %79 = vector.shape_cast %41 : vector<2x8x8xf32> to vector<1x2x8x8xf32>
    %80 = vector.broadcast %79 : vector<1x2x8x8xf32> to vector<4x2x8x8xf32>
    %81 = arith.addf %78, %80 : vector<4x2x8x8xf32>
    %82 = vector.shape_cast %81 : vector<4x2x8x8xf32> to vector<8x8x8xf32>
    %cst_27 = arith.constant dense<0xFF800000> : vector<8x8xf32>
    %83 = vector.multi_reduction <maximumf>, %82, %cst_27 [2] : vector<8x8x8xf32> to vector<8x8xf32>
    %84 = vector.shape_cast %83 : vector<8x8xf32> to vector<8x8x1xf32>
    %85 = vector.broadcast %84 : vector<8x8x1xf32> to vector<8x8x8xf32>
    %86 = arith.subf %82, %85 : vector<8x8x8xf32>
    %87 = math.exp %86 : vector<8x8x8xf32>
    %cst_28 = arith.constant dense<0.000000e+00> : vector<8x8xf32>
    %88 = vector.multi_reduction <add>, %87, %cst_28 [2] : vector<8x8x8xf32> to vector<8x8xf32>
    %89 = vector.shape_cast %88 : vector<8x8xf32> to vector<8x8x1xf32>
    %90 = tpu.reciprocal %89 {approx = true} : vector<8x8x1xf32> -> vector<8x8x1xf32>
    %91 = vector.broadcast %90 : vector<8x8x1xf32> to vector<8x8x8xf32>
    %92 = arith.mulf %87, %91 : vector<8x8x8xf32>
    %93 = arith.truncf %92 : vector<8x8x8xf32> to vector<8x8x8xbf16>
    "tpu.trace_start"() <{level = 10 : i32, message = "bqk,bkd->bqd"}> : () -> ()
    %cst_29 = arith.constant dense<0.000000e+00> : vector<8x8x8xf32>
    %94 = tpu.matmul %93, %74, %cst_29 {dimension_numbers = #tpu.dot_dimension_numbers<[2], [1], [1], [2], [0, 0, 0, 1, 1, 2], [0], [0]>} : vector<8x8x8xbf16>, vector<8x8x8xbf16>, vector<8x8x8xf32> -> vector<8x8x8xf32>
    "tpu.trace_stop"() : () -> ()
    %95 = vector.shape_cast %94 : vector<8x8x8xf32> to vector<4x2x8x8xf32>
    %96 = vector.extract_strided_slice %95 {offsets = [0, 0, 0, 0], sizes = [1, 2, 8, 8], strides = [1, 1, 1, 1]} : vector<4x2x8x8xf32> to vector<1x2x8x8xf32>
    %97 = vector.shape_cast %96 : vector<1x2x8x8xf32> to vector<2x8x8xf32>
    %98 = vector.shape_cast %97 : vector<2x8x8xf32> to vector<16x8xf32>
    %99 = vector.extract_strided_slice %95 {offsets = [1, 0, 0, 0], sizes = [1, 2, 8, 8], strides = [1, 1, 1, 1]} : vector<4x2x8x8xf32> to vector<1x2x8x8xf32>
    %100 = vector.shape_cast %99 : vector<1x2x8x8xf32> to vector<2x8x8xf32>
    %101 = vector.shape_cast %100 : vector<2x8x8xf32> to vector<16x8xf32>
    %102 = vector.extract_strided_slice %95 {offsets = [2, 0, 0, 0], sizes = [1, 2, 8, 8], strides = [1, 1, 1, 1]} : vector<4x2x8x8xf32> to vector<1x2x8x8xf32>
    %103 = vector.shape_cast %102 : vector<1x2x8x8xf32> to vector<2x8x8xf32>
    %104 = vector.shape_cast %103 : vector<2x8x8xf32> to vector<16x8xf32>
    %105 = vector.extract_strided_slice %95 {offsets = [3, 0, 0, 0], sizes = [1, 2, 8, 8], strides = [1, 1, 1, 1]} : vector<4x2x8x8xf32> to vector<1x2x8x8xf32>
    %106 = vector.shape_cast %105 : vector<1x2x8x8xf32> to vector<2x8x8xf32>
    %107 = vector.shape_cast %106 : vector<2x8x8xf32> to vector<16x8xf32>
    %108 = tpu.concatenate %98, %101, %104, %107 in 1 : vector<16x8xf32>, vector<16x8xf32>, vector<16x8xf32>, vector<16x8xf32> -> vector<16x32xf32>
    %c0_30 = arith.constant 0 : index
    %c0_31 = arith.constant 0 : index
    %109 = vector.load %arg7[%c0_30, %c0_31] : memref<32x32xbf16, #tpu.memory_space<vmem>>, vector<32x32xbf16>
    %110 = vector.extract_strided_slice %4 {offsets = [0, 0], sizes = [1, 32], strides = [1, 1]} : vector<1x64xf32> to vector<1x32xf32>
    %111 = arith.truncf %108 : vector<16x32xf32> to vector<16x32xbf16>
    %cst_32 = arith.constant dense<0.000000e+00> : vector<16x32xf32>
    %112 = tpu.matmul %111, %109, %cst_32 {dimension_numbers = #tpu.dot_dimension_numbers<[1], [0], [0], [1], [0, 0, 1, 1], [], []>} : vector<16x32xbf16>, vector<32x32xbf16>, vector<16x32xf32> -> vector<16x32xf32>
    %113 = vector.broadcast %110 : vector<1x32xf32> to vector<16x32xf32>
    %114 = arith.addf %112, %113 : vector<16x32xf32>
    %115 = arith.addf %0, %114 : vector<16x32xf32>
    %cst_33 = arith.constant dense<0.000000e+00> : vector<16xf32>
    %116 = vector.multi_reduction <add>, %115, %cst_33 [1] : vector<16x32xf32> to vector<16xf32>
    %117 = vector.shape_cast %116 : vector<16xf32> to vector<16x1xf32>
    %cst_34 = arith.constant 3.200000e+01 : f32
    %118 = vector.broadcast %cst_34 : f32 to vector<16x1xf32>
    %119 = arith.divf %117, %118 : vector<16x1xf32>
    %120 = vector.broadcast %119 : vector<16x1xf32> to vector<16x32xf32>
    %121 = arith.subf %115, %120 : vector<16x32xf32>
    %122 = arith.mulf %121, %121 : vector<16x32xf32>
    %cst_35 = arith.constant dense<0.000000e+00> : vector<16xf32>
    %123 = vector.multi_reduction <add>, %122, %cst_35 [1] : vector<16x32xf32> to vector<16xf32>
    %124 = vector.shape_cast %123 : vector<16xf32> to vector<16x1xf32>
    %cst_36 = arith.constant 0.0322580636 : f32
    %125 = vector.broadcast %cst_36 : f32 to vector<16x1xf32>
    %126 = arith.mulf %124, %125 : vector<16x1xf32>
    %127 = math.sqrt %126 : vector<16x1xf32>
    %cst_37 = arith.constant 9.99999997E-7 : f32
    %128 = vector.broadcast %cst_37 : f32 to vector<16x1xf32>
    %129 = arith.addf %127, %128 : vector<16x1xf32>
    %130 = tpu.reciprocal %129 {approx = true} : vector<16x1xf32> -> vector<16x1xf32>
    %131 = vector.extract_strided_slice %2 {offsets = [1, 0], sizes = [1, 32], strides = [1, 1]} : vector<3x32xf32> to vector<1x32xf32>
    %132 = vector.broadcast %119 : vector<16x1xf32> to vector<16x32xf32>
    %133 = arith.subf %115, %132 : vector<16x32xf32>
    %134 = vector.broadcast %131 : vector<1x32xf32> to vector<16x32xf32>
    %135 = arith.mulf %134, %133 : vector<16x32xf32>
    %136 = vector.broadcast %130 : vector<16x1xf32> to vector<16x32xf32>
    %137 = arith.mulf %135, %136 : vector<16x32xf32>
    %138 = vector.extract_strided_slice %3 {offsets = [1, 0], sizes = [1, 32], strides = [1, 1]} : vector<3x32xf32> to vector<1x32xf32>
    %139 = vector.broadcast %138 : vector<1x32xf32> to vector<16x32xf32>
    %140 = arith.addf %137, %139 : vector<16x32xf32>
    %c0_38 = arith.constant 0 : index
    %c0_39 = arith.constant 0 : index
    %141 = vector.load %arg8[%c0_38, %c0_39] : memref<32x32xbf16, #tpu.memory_space<vmem>>, vector<32x32xbf16>
    %142 = vector.extract_strided_slice %5 {offsets = [0, 0], sizes = [1, 32], strides = [1, 1]} : vector<1x96xf32> to vector<1x32xf32>
    %143 = arith.truncf %140 : vector<16x32xf32> to vector<16x32xbf16>
    %cst_40 = arith.constant dense<0.000000e+00> : vector<16x32xf32>
    %144 = tpu.matmul %143, %141, %cst_40 {dimension_numbers = #tpu.dot_dimension_numbers<[1], [0], [0], [1], [0, 0, 1, 1], [], []>} : vector<16x32xbf16>, vector<32x32xbf16>, vector<16x32xf32> -> vector<16x32xf32>
    %145 = vector.broadcast %142 : vector<1x32xf32> to vector<16x32xf32>
    %146 = arith.addf %144, %145 : vector<16x32xf32>
    %c0_41 = arith.constant 0 : index
    %c0_42 = arith.constant 0 : index
    %147 = vector.load %arg9[%c0_41, %c0_42] : memref<32x64xbf16, #tpu.memory_space<vmem>>, vector<32x64xbf16>
    %148 = vector.extract_strided_slice %5 {offsets = [0, 32], sizes = [1, 64], strides = [1, 1]} : vector<1x96xf32> to vector<1x64xf32>
    %149 = arith.truncf %1 : vector<16x32xf32> to vector<16x32xbf16>
    %cst_43 = arith.constant dense<0.000000e+00> : vector<16x64xf32>
    %150 = tpu.matmul %149, %147, %cst_43 {dimension_numbers = #tpu.dot_dimension_numbers<[1], [0], [0], [1], [0, 0, 1, 1], [], []>} : vector<16x32xbf16>, vector<32x64xbf16>, vector<16x64xf32> -> vector<16x64xf32>
    %151 = vector.broadcast %148 : vector<1x64xf32> to vector<16x64xf32>
    %152 = arith.addf %150, %151 : vector<16x64xf32>
    %153 = vector.extract_strided_slice %152 {offsets = [0, 0], sizes = [16, 32], strides = [1, 1]} : vector<16x64xf32> to vector<16x32xf32>
    %154 = vector.extract_strided_slice %152 {offsets = [0, 32], sizes = [16, 32], strides = [1, 1]} : vector<16x64xf32> to vector<16x32xf32>
    %c0_44 = arith.constant 0 : index
    %c0_45 = arith.constant 0 : index
    %c0_46 = arith.constant 0 : index
    %155 = vector.load %arg4[%c0_44, %c0_45, %c0_46] : memref<2x1x8xf32, #tpu.memory_space<vmem>>, vector<2x1x8xf32>
    %156 = vector.extract_strided_slice %146 {offsets = [0, 0], sizes = [16, 8], strides = [1, 1]} : vector<16x32xf32> to vector<16x8xf32>
    %157 = vector.shape_cast %156 : vector<16x8xf32> to vector<1x2x8x8xf32>
    %158 = vector.extract_strided_slice %146 {offsets = [0, 8], sizes = [16, 8], strides = [1, 1]} : vector<16x32xf32> to vector<16x8xf32>
    %159 = vector.shape_cast %158 : vector<16x8xf32> to vector<1x2x8x8xf32>
    %160 = vector.extract_strided_slice %146 {offsets = [0, 16], sizes = [16, 8], strides = [1, 1]} : vector<16x32xf32> to vector<16x8xf32>
    %161 = vector.shape_cast %160 : vector<16x8xf32> to vector<1x2x8x8xf32>
    %162 = vector.extract_strided_slice %146 {offsets = [0, 24], sizes = [16, 8], strides = [1, 1]} : vector<16x32xf32> to vector<16x8xf32>
    %163 = vector.shape_cast %162 : vector<16x8xf32> to vector<1x2x8x8xf32>
    %164 = tpu.concatenate %157, %159, %161, %163 in 0 : vector<1x2x8x8xf32>, vector<1x2x8x8xf32>, vector<1x2x8x8xf32>, vector<1x2x8x8xf32> -> vector<4x2x8x8xf32>
    %165 = vector.shape_cast %164 : vector<4x2x8x8xf32> to vector<8x8x8xf32>
    %166 = arith.truncf %165 : vector<8x8x8xf32> to vector<8x8x8xbf16>
    %167 = vector.extract_strided_slice %153 {offsets = [0, 0], sizes = [16, 8], strides = [1, 1]} : vector<16x32xf32> to vector<16x8xf32>
    %168 = vector.shape_cast %167 : vector<16x8xf32> to vector<1x2x8x8xf32>
    %169 = vector.extract_strided_slice %153 {offsets = [0, 8], sizes = [16, 8], strides = [1, 1]} : vector<16x32xf32> to vector<16x8xf32>
    %170 = vector.shape_cast %169 : vector<16x8xf32> to vector<1x2x8x8xf32>
    %171 = vector.extract_strided_slice %153 {offsets = [0, 16], sizes = [16, 8], strides = [1, 1]} : vector<16x32xf32> to vector<16x8xf32>
    %172 = vector.shape_cast %171 : vector<16x8xf32> to vector<1x2x8x8xf32>
    %173 = vector.extract_strided_slice %153 {offsets = [0, 24], sizes = [16, 8], strides = [1, 1]} : vector<16x32xf32> to vector<16x8xf32>
    %174 = vector.shape_cast %173 : vector<16x8xf32> to vector<1x2x8x8xf32>
    %175 = tpu.concatenate %168, %170, %172, %174 in 0 : vector<1x2x8x8xf32>, vector<1x2x8x8xf32>, vector<1x2x8x8xf32>, vector<1x2x8x8xf32> -> vector<4x2x8x8xf32>
    %176 = vector.shape_cast %175 : vector<4x2x8x8xf32> to vector<8x8x8xf32>
    %177 = arith.truncf %176 : vector<8x8x8xf32> to vector<8x8x8xbf16>
    %178 = vector.extract_strided_slice %154 {offsets = [0, 0], sizes = [16, 8], strides = [1, 1]} : vector<16x32xf32> to vector<16x8xf32>
    %179 = vector.shape_cast %178 : vector<16x8xf32> to vector<1x2x8x8xf32>
    %180 = vector.extract_strided_slice %154 {offsets = [0, 8], sizes = [16, 8], strides = [1, 1]} : vector<16x32xf32> to vector<16x8xf32>
    %181 = vector.shape_cast %180 : vector<16x8xf32> to vector<1x2x8x8xf32>
    %182 = vector.extract_strided_slice %154 {offsets = [0, 16], sizes = [16, 8], strides = [1, 1]} : vector<16x32xf32> to vector<16x8xf32>
    %183 = vector.shape_cast %182 : vector<16x8xf32> to vector<1x2x8x8xf32>
    %184 = vector.extract_strided_slice %154 {offsets = [0, 24], sizes = [16, 8], strides = [1, 1]} : vector<16x32xf32> to vector<16x8xf32>
    %185 = vector.shape_cast %184 : vector<16x8xf32> to vector<1x2x8x8xf32>
    %186 = tpu.concatenate %179, %181, %183, %185 in 0 : vector<1x2x8x8xf32>, vector<1x2x8x8xf32>, vector<1x2x8x8xf32>, vector<1x2x8x8xf32> -> vector<4x2x8x8xf32>
    %187 = vector.shape_cast %186 : vector<4x2x8x8xf32> to vector<8x8x8xf32>
    %188 = arith.truncf %187 : vector<8x8x8xf32> to vector<8x8x8xbf16>
    "tpu.trace_start"() <{level = 10 : i32, message = "bqd,bkd->bqk"}> : () -> ()
    %cst_47 = arith.constant dense<0.000000e+00> : vector<8x8x8xf32>
    %189 = tpu.matmul %166, %177, %cst_47 {dimension_numbers = #tpu.dot_dimension_numbers<[2], [2], [1], [1], [0, 0, 0, 1, 1, 1], [0], [0]>} : vector<8x8x8xbf16>, vector<8x8x8xbf16>, vector<8x8x8xf32> -> vector<8x8x8xf32>
    "tpu.trace_stop"() : () -> ()
    %cst_48 = arith.constant 0.353553385 : f32
    %190 = vector.broadcast %cst_48 : f32 to vector<8x8x8xf32>
    %191 = arith.mulf %189, %190 : vector<8x8x8xf32>
    %192 = vector.shape_cast %191 : vector<8x8x8xf32> to vector<4x2x8x8xf32>
    %193 = vector.shape_cast %155 : vector<2x1x8xf32> to vector<1x2x1x8xf32>
    %194 = vector.broadcast %193 : vector<1x2x1x8xf32> to vector<4x2x8x8xf32>
    %195 = arith.addf %192, %194 : vector<4x2x8x8xf32>
    %196 = vector.shape_cast %195 : vector<4x2x8x8xf32> to vector<8x8x8xf32>
    %cst_49 = arith.constant dense<0xFF800000> : vector<8x8xf32>
    %197 = vector.multi_reduction <maximumf>, %196, %cst_49 [2] : vector<8x8x8xf32> to vector<8x8xf32>
    %198 = vector.shape_cast %197 : vector<8x8xf32> to vector<8x8x1xf32>
    %199 = vector.broadcast %198 : vector<8x8x1xf32> to vector<8x8x8xf32>
    %200 = arith.subf %196, %199 : vector<8x8x8xf32>
    %201 = math.exp %200 : vector<8x8x8xf32>
    %cst_50 = arith.constant dense<0.000000e+00> : vector<8x8xf32>
    %202 = vector.multi_reduction <add>, %201, %cst_50 [2] : vector<8x8x8xf32> to vector<8x8xf32>
    %203 = vector.shape_cast %202 : vector<8x8xf32> to vector<8x8x1xf32>
    %204 = tpu.reciprocal %203 {approx = true} : vector<8x8x1xf32> -> vector<8x8x1xf32>
    %205 = vector.broadcast %204 : vector<8x8x1xf32> to vector<8x8x8xf32>
    %206 = arith.mulf %201, %205 : vector<8x8x8xf32>
    %207 = arith.truncf %206 : vector<8x8x8xf32> to vector<8x8x8xbf16>
    "tpu.trace_start"() <{level = 10 : i32, message = "bqk,bkd->bqd"}> : () -> ()
    %cst_51 = arith.constant dense<0.000000e+00> : vector<8x8x8xf32>
    %208 = tpu.matmul %207, %188, %cst_51 {dimension_numbers = #tpu.dot_dimension_numbers<[2], [1], [1], [2], [0, 0, 0, 1, 1, 2], [0], [0]>} : vector<8x8x8xbf16>, vector<8x8x8xbf16>, vector<8x8x8xf32> -> vector<8x8x8xf32>
    "tpu.trace_stop"() : () -> ()
    %209 = vector.shape_cast %208 : vector<8x8x8xf32> to vector<4x2x8x8xf32>
    %210 = vector.extract_strided_slice %209 {offsets = [0, 0, 0, 0], sizes = [1, 2, 8, 8], strides = [1, 1, 1, 1]} : vector<4x2x8x8xf32> to vector<1x2x8x8xf32>
    %211 = vector.shape_cast %210 : vector<1x2x8x8xf32> to vector<2x8x8xf32>
    %212 = vector.shape_cast %211 : vector<2x8x8xf32> to vector<16x8xf32>
    %213 = vector.extract_strided_slice %209 {offsets = [1, 0, 0, 0], sizes = [1, 2, 8, 8], strides = [1, 1, 1, 1]} : vector<4x2x8x8xf32> to vector<1x2x8x8xf32>
    %214 = vector.shape_cast %213 : vector<1x2x8x8xf32> to vector<2x8x8xf32>
    %215 = vector.shape_cast %214 : vector<2x8x8xf32> to vector<16x8xf32>
    %216 = vector.extract_strided_slice %209 {offsets = [2, 0, 0, 0], sizes = [1, 2, 8, 8], strides = [1, 1, 1, 1]} : vector<4x2x8x8xf32> to vector<1x2x8x8xf32>
    %217 = vector.shape_cast %216 : vector<1x2x8x8xf32> to vector<2x8x8xf32>
    %218 = vector.shape_cast %217 : vector<2x8x8xf32> to vector<16x8xf32>
    %219 = vector.extract_strided_slice %209 {offsets = [3, 0, 0, 0], sizes = [1, 2, 8, 8], strides = [1, 1, 1, 1]} : vector<4x2x8x8xf32> to vector<1x2x8x8xf32>
    %220 = vector.shape_cast %219 : vector<1x2x8x8xf32> to vector<2x8x8xf32>
    %221 = vector.shape_cast %220 : vector<2x8x8xf32> to vector<16x8xf32>
    %222 = tpu.concatenate %212, %215, %218, %221 in 1 : vector<16x8xf32>, vector<16x8xf32>, vector<16x8xf32>, vector<16x8xf32> -> vector<16x32xf32>
    %c0_52 = arith.constant 0 : index
    %c0_53 = arith.constant 0 : index
    %223 = vector.load %arg11[%c0_52, %c0_53] : memref<32x32xbf16, #tpu.memory_space<vmem>>, vector<32x32xbf16>
    %224 = vector.extract_strided_slice %4 {offsets = [0, 32], sizes = [1, 32], strides = [1, 1]} : vector<1x64xf32> to vector<1x32xf32>
    %225 = arith.truncf %222 : vector<16x32xf32> to vector<16x32xbf16>
    %cst_54 = arith.constant dense<0.000000e+00> : vector<16x32xf32>
    %226 = tpu.matmul %225, %223, %cst_54 {dimension_numbers = #tpu.dot_dimension_numbers<[1], [0], [0], [1], [0, 0, 1, 1], [], []>} : vector<16x32xbf16>, vector<32x32xbf16>, vector<16x32xf32> -> vector<16x32xf32>
    %227 = vector.broadcast %224 : vector<1x32xf32> to vector<16x32xf32>
    %228 = arith.addf %226, %227 : vector<16x32xf32>
    %229 = arith.addf %115, %228 : vector<16x32xf32>
    %cst_55 = arith.constant dense<0.000000e+00> : vector<16xf32>
    %230 = vector.multi_reduction <add>, %229, %cst_55 [1] : vector<16x32xf32> to vector<16xf32>
    %231 = vector.shape_cast %230 : vector<16xf32> to vector<16x1xf32>
    %cst_56 = arith.constant 3.200000e+01 : f32
    %232 = vector.broadcast %cst_56 : f32 to vector<16x1xf32>
    %233 = arith.divf %231, %232 : vector<16x1xf32>
    %234 = vector.broadcast %233 : vector<16x1xf32> to vector<16x32xf32>
    %235 = arith.subf %229, %234 : vector<16x32xf32>
    %236 = arith.mulf %235, %235 : vector<16x32xf32>
    %cst_57 = arith.constant dense<0.000000e+00> : vector<16xf32>
    %237 = vector.multi_reduction <add>, %236, %cst_57 [1] : vector<16x32xf32> to vector<16xf32>
    %238 = vector.shape_cast %237 : vector<16xf32> to vector<16x1xf32>
    %cst_58 = arith.constant 0.0322580636 : f32
    %239 = vector.broadcast %cst_58 : f32 to vector<16x1xf32>
    %240 = arith.mulf %238, %239 : vector<16x1xf32>
    %241 = math.sqrt %240 : vector<16x1xf32>
    %cst_59 = arith.constant 9.99999997E-7 : f32
    %242 = vector.broadcast %cst_59 : f32 to vector<16x1xf32>
    %243 = arith.addf %241, %242 : vector<16x1xf32>
    %244 = tpu.reciprocal %243 {approx = true} : vector<16x1xf32> -> vector<16x1xf32>
    %245 = vector.extract_strided_slice %2 {offsets = [2, 0], sizes = [1, 32], strides = [1, 1]} : vector<3x32xf32> to vector<1x32xf32>
    %246 = vector.broadcast %233 : vector<16x1xf32> to vector<16x32xf32>
    %247 = arith.subf %229, %246 : vector<16x32xf32>
    %248 = vector.broadcast %245 : vector<1x32xf32> to vector<16x32xf32>
    %249 = arith.mulf %248, %247 : vector<16x32xf32>
    %250 = vector.broadcast %244 : vector<16x1xf32> to vector<16x32xf32>
    %251 = arith.mulf %249, %250 : vector<16x32xf32>
    %252 = vector.extract_strided_slice %3 {offsets = [2, 0], sizes = [1, 32], strides = [1, 1]} : vector<3x32xf32> to vector<1x32xf32>
    %253 = vector.broadcast %252 : vector<1x32xf32> to vector<16x32xf32>
    %254 = arith.addf %251, %253 : vector<16x32xf32>
    %c0_60 = arith.constant 0 : index
    %c0_61 = arith.constant 0 : index
    %255 = vector.load %arg13[%c0_60, %c0_61] : memref<32x64xbf16, #tpu.memory_space<vmem>>, vector<32x64xbf16>
    %256 = vector.extract_strided_slice %6 {offsets = [0, 0], sizes = [1, 64], strides = [1, 1]} : vector<1x96xf32> to vector<1x64xf32>
    %257 = arith.truncf %254 : vector<16x32xf32> to vector<16x32xbf16>
    %cst_62 = arith.constant dense<0.000000e+00> : vector<16x64xf32>
    %258 = tpu.matmul %257, %255, %cst_62 {dimension_numbers = #tpu.dot_dimension_numbers<[1], [0], [0], [1], [0, 0, 1, 1], [], []>} : vector<16x32xbf16>, vector<32x64xbf16>, vector<16x64xf32> -> vector<16x64xf32>
    %259 = vector.broadcast %256 : vector<1x64xf32> to vector<16x64xf32>
    %260 = arith.addf %258, %259 : vector<16x64xf32>
    %cst_63 = arith.constant 0.000000e+00 : f32
    %261 = vector.broadcast %cst_63 : f32 to vector<16x64xf32>
    %262 = arith.maximumf %260, %261 : vector<16x64xf32>
    %c0_64 = arith.constant 0 : index
    %c0_65 = arith.constant 0 : index
    %263 = vector.load %arg14[%c0_64, %c0_65] : memref<64x32xbf16, #tpu.memory_space<vmem>>, vector<64x32xbf16>
    %264 = vector.extract_strided_slice %6 {offsets = [0, 64], sizes = [1, 32], strides = [1, 1]} : vector<1x96xf32> to vector<1x32xf32>
    %265 = arith.truncf %262 : vector<16x64xf32> to vector<16x64xbf16>
    %cst_66 = arith.constant dense<0.000000e+00> : vector<16x32xf32>
    %266 = tpu.matmul %265, %263, %cst_66 {dimension_numbers = #tpu.dot_dimension_numbers<[1], [0], [0], [1], [0, 0, 1, 1], [], []>} : vector<16x64xbf16>, vector<64x32xbf16>, vector<16x32xf32> -> vector<16x32xf32>
    %267 = vector.broadcast %264 : vector<1x32xf32> to vector<16x32xf32>
    %268 = arith.addf %266, %267 : vector<16x32xf32>
    %269 = arith.addf %229, %268 : vector<16x32xf32>
    %c0_67 = arith.constant 0 : index
    %c0_68 = arith.constant 0 : index
    %270 = vector.load %arg18[%c0_67, %c0_68] : memref<16x32xf32, #tpu.memory_space<vmem>>, vector<16x32xf32>
    tpu.vector_store %arg18[%c0_67, %c0_68], %269 {strides = array<i32>} : memref<16x32xf32, #tpu.memory_space<vmem>>, vector<16x32xf32>,
    return
  }
  func.func @transform_0(%arg0: i32) -> (i32, i32) {
    %c0_i32 = arith.constant 0 : i32
    %c0_i32_0 = arith.constant 0 : i32
    return %arg0, %c0_i32 : i32, i32
  }
  func.func @transform_1(%arg0: i32) -> (i32, i32) {
    %c0_i32 = arith.constant 0 : i32
    %c0_i32_0 = arith.constant 0 : i32
    return %arg0, %c0_i32 : i32, i32
  }
  func.func @transform_2(%arg0: i32) -> (i32, i32, i32) {
    %c0_i32 = arith.constant 0 : i32
    %c0_i32_0 = arith.constant 0 : i32
    %c0_i32_1 = arith.constant 0 : i32
    return %arg0, %c0_i32, %c0_i32_0 : i32, i32, i32
  }
  func.func @transform_3(%arg0: i32) -> (i32, i32, i32) {
    %c0_i32 = arith.constant 0 : i32
    %c0_i32_0 = arith.constant 0 : i32
    %c0_i32_1 = arith.constant 0 : i32
    return %arg0, %c0_i32, %c0_i32_0 : i32, i32, i32
  }
  func.func @transform_4(%arg0: i32) -> (i32, i32) {
    %c0_i32 = arith.constant 0 : i32
    %c0_i32_0 = arith.constant 0 : i32
    %c0_i32_1 = arith.constant 0 : i32
    return %c0_i32, %c0_i32_0 : i32, i32
  }
  func.func @transform_5(%arg0: i32) -> (i32, i32) {
    %c0_i32 = arith.constant 0 : i32
    %c0_i32_0 = arith.constant 0 : i32
    %c0_i32_1 = arith.constant 0 : i32
    return %c0_i32, %c0_i32_0 : i32, i32
  }
  func.func @transform_6(%arg0: i32) -> (i32, i32) {
    %c0_i32 = arith.constant 0 : i32
    %c0_i32_0 = arith.constant 0 : i32
    %c0_i32_1 = arith.constant 0 : i32
    return %c0_i32, %c0_i32_0 : i32, i32
  }
  func.func @transform_7(%arg0: i32) -> (i32, i32) {
    %c0_i32 = arith.constant 0 : i32
    %c0_i32_0 = arith.constant 0 : i32
    %c0_i32_1 = arith.constant 0 : i32
    return %c0_i32, %c0_i32_0 : i32, i32
  }
  func.func @transform_8(%arg0: i32) -> (i32, i32) {
    %c0_i32 = arith.constant 0 : i32
    %c0_i32_0 = arith.constant 0 : i32
    %c0_i32_1 = arith.constant 0 : i32
    return %c0_i32, %c0_i32_0 : i32, i32
  }
  func.func @transform_9(%arg0: i32) -> (i32, i32) {
    %c0_i32 = arith.constant 0 : i32
    %c0_i32_0 = arith.constant 0 : i32
    %c0_i32_1 = arith.constant 0 : i32
    return %c0_i32, %c0_i32_0 : i32, i32
  }
  func.func @transform_10(%arg0: i32) -> (i32, i32) {
    %c0_i32 = arith.constant 0 : i32
    %c0_i32_0 = arith.constant 0 : i32
    %c0_i32_1 = arith.constant 0 : i32
    return %c0_i32, %c0_i32_0 : i32, i32
  }
  func.func @transform_11(%arg0: i32) -> (i32, i32) {
    %c0_i32 = arith.constant 0 : i32
    %c0_i32_0 = arith.constant 0 : i32
    %c0_i32_1 = arith.constant 0 : i32
    return %c0_i32, %c0_i32_0 : i32, i32
  }
  func.func @transform_12(%arg0: i32) -> (i32, i32) {
    %c0_i32 = arith.constant 0 : i32
    %c0_i32_0 = arith.constant 0 : i32
    %c0_i32_1 = arith.constant 0 : i32
    return %c0_i32, %c0_i32_0 : i32, i32
  }
  func.func @transform_13(%arg0: i32) -> (i32, i32) {
    %c0_i32 = arith.constant 0 : i32
    %c0_i32_0 = arith.constant 0 : i32
    %c0_i32_1 = arith.constant 0 : i32
    return %c0_i32, %c0_i32_0 : i32, i32
  }
  func.func @transform_14(%arg0: i32) -> (i32, i32) {
    %c0_i32 = arith.constant 0 : i32
    %c0_i32_0 = arith.constant 0 : i32
    %c0_i32_1 = arith.constant 0 : i32
    return %c0_i32, %c0_i32_0 : i32, i32
  }
  func.func @transform_15(%arg0: i32) -> (i32, i32) {
    %c0_i32 = arith.constant 0 : i32
    %c0_i32_0 = arith.constant 0 : i32
    %c0_i32_1 = arith.constant 0 : i32
    return %c0_i32, %c0_i32_0 : i32, i32
  }
  func.func @transform_16(%arg0: i32) -> (i32, i32) {
    %c0_i32 = arith.constant 0 : i32
    %c0_i32_0 = arith.constant 0 : i32
    %c0_i32_1 = arith.constant 0 : i32
    return %c0_i32, %c0_i32_0 : i32, i32
  }
  func.func @transform_17(%arg0: i32) -> (i32, i32) {
    %c0_i32 = arith.constant 0 : i32
    %c0_i32_0 = arith.constant 0 : i32
    return %arg0, %c0_i32 : i32, i32
  }
}

</mosaic_0001>

<bundles_post_ra>
// kernel: tpu_custom_call.1
= control target key start
LH: loop header
LB: loop body
LE: loop exit
PB: predicated region body
PF: predicated region fallthrough
CT: control target
= control target key end

     0   :  { %s4374_s0 = inlined_call_operand.vmem [shape: f32[16,32], index: 0, kind: input, shape index: {}]   ;;  %s4375_s1 = inlined_call_operand.vmem [shape: f32[16,32], index: 1, kind: input, shape index: {}]   ;;  %s4376_s2 = inlined_call_operand.vmem [shape: f32[2,8,8], index: 2, kind: input, shape index: {}]   ;;  %s4377_s3 = inlined_call_operand.hbm [shape: f32[2,1,8], index: 3, kind: input, shape index: {}]   ;;  %s4378_s4 = inlined_call_operand.hbm [shape: bf16[32,96], index: 4, kind: input, shape index: {}]   ;;  %s4379_s5 = inlined_call_operand.vmem [shape: f32[1,96], index: 5, kind: input, shape index: {}]   ;;  %s4380_s6 = inlined_call_operand.hbm [shape: bf16[32,32], index: 6, kind: input, shape index: {}]   ;;  %s4381_s7 = inlined_call_operand.hbm [shape: bf16[32,32], index: 7, kind: input, shape index: {}]   ;;  %s4382_s8 = inlined_call_operand.hbm [shape: bf16[32,64], index: 8, kind: input, shape index: {}]   ;;  %s4383_s9 = inlined_call_operand.hbm [shape: f32[1,96], index: 9, kind: input, shape index: {}]   ;;  %s4384_s10 = inlined_call_operand.vmem [shape: bf16[32,32], index: 10, kind: input, shape index: {}]   ;;  %s4385_s11 = inlined_call_operand.hbm [shape: f32[1,64], index: 11, kind: input, shape index: {}]   ;;  %s4386_s12 = inlined_call_operand.hbm [shape: bf16[32,64], index: 12, kind: input, shape index: {}]   ;;  %s4387_s13 = inlined_call_operand.vmem [shape: bf16[64,32], index: 13, kind: input, shape index: {}]   ;;  %s4388_s14 = inlined_call_operand.vmem [shape: f32[1,96], index: 14, kind: input, shape index: {}]   ;;  %s4389_s15 = inlined_call_operand.vmem [shape: f32[3,32], index: 15, kind: input, shape index: {}]   ;;  %s4390_s16 = inlined_call_operand.vmem [shape: f32[3,32], index: 16, kind: input, shape index: {}]   ;;  %s4391_s17 = inlined_call_operand.hbm [shape: f32[16,32], index: 17, kind: output, shape index: {}]  }
   0x1   :  { %4395 = sst [smem:[#allocation23_spill]] %s4374_s0 }
   0x2   :  { %4396 = sst [smem:[#allocation24_spill]] %s4375_s1 }
   0x3   :  { %4397 = sst [smem:[#allocation25_spill]] %s4391_s17 }
   0x4   :  { %22 = vsyncpa [#allocation3], 0 }
   0x5   :  { %23 = vsyncpa [#allocation6], 0 }
   0x6   :  { %24 = vsyncpa [#allocation9], 0 }
   0x7   :  { %25 = vsyncpa [#allocation12], 0 }
   0x8   :  { %26 = vsyncpa [#allocation15], 0 }
   0x9   :  { %27 = vsyncpa [#allocation4], 0  ;;  %s3576_s24 = smov [#allocation5]   ;;  %s3366_s28 = scalar_lea.hbm %s4378_s4, 256 }
   0xa   :  { %s51_s25 = sshll.u32 %s3576_s24, 4  ;;  %p3367_p0 = scmp.ne.s32.totalorder %s4378_s4, %s3366_s28  ;;  %s52_s25 = int_to_ptr.vmem [resolvable:$true] %s51_s25 }
   0xb   :  { %p3370_p1 = scmp.lt.u32.totalorder %s3366_s28, %s4378_s4 }
   0xd   :  { %p3372_p2 = pnand %p3370_p1, %p3367_p0 }
   0xf   :  { %3375 = shalt.err (!%p3372_p2)
}
  0x10   :  { %s3376_s19 = scalar_lea.vmem %s52_s25, 256  ;;  %p3381_p4 = scmp.lt.s32.totalorder %s52_s25, %s52_s25 }
  0x11   :  { %p3377_p3 = scmp.ne.s32.totalorder %s52_s25, %s3376_s19  ;;  %p3382_p5 = scmp.lt.s32.totalorder %s3376_s19, %s3376_s19 }
  0x13   :  { %p3383_p6 = por %p3382_p5, %p3381_p4 }
  0x15   :  { %p3384_p7 = pnand %p3383_p6, %p3377_p3 }
  0x17   :  { %3387 = shalt.err (!%p3384_p7)
}
  0x18   :  { %s3577_s1 = smov 64   ;;  %s3578_s20 = smov 4  }
  0x19   :  { %57 = dma.hbm_to_vmem [thread:$0]  %s4378_s4, 256, %s52_s25, [#allocation6], %s3577_s1, %s3577_s1, %s3578_s20  }
  0x1a   :  { %s3579_s23 = smov [#allocation8]   ;;  %s3580_s26 = smov [#allocation11]  }
  0x1b   :  { %s77_s24 = sshll.u32 %s3579_s23, 4  ;;  %s102_s27 = sshll.u32 %s3580_s26, 4  ;;  %s78_s24 = int_to_ptr.vmem [resolvable:$true] %s77_s24  ;;  %s103_s27 = int_to_ptr.vmem [resolvable:$true] %s102_s27 }
  0x1c   :  { %s3388_s0 = scalar_lea.hbm %s4381_s7, 256 }
  0x1d   :  { %p3389_p8 = scmp.ne.s32.totalorder %s4381_s7, %s3388_s0  ;;  %p3392_p9 = scmp.lt.u32.totalorder %s3388_s0, %s4381_s7 }
  0x1f   :  { %p3394_p10 = pnand %p3392_p9, %p3389_p8 }
  0x21   :  { %3397 = shalt.err (!%p3394_p10)
}
  0x22   :  { %s3398_s4 = scalar_lea.vmem %s78_s24, 256  ;;  %p3403_p12 = scmp.lt.s32.totalorder %s78_s24, %s78_s24 }
  0x23   :  { %p3399_p11 = scmp.ne.s32.totalorder %s78_s24, %s3398_s4  ;;  %p3404_p13 = scmp.lt.s32.totalorder %s3398_s4, %s3398_s4 }
  0x25   :  { %p3405_p0 = por %p3404_p13, %p3403_p12 }
  0x27   :  { %p3406_p1 = pnand %p3405_p0, %p3399_p11 }
  0x29   :  { %3409 = shalt.err (!%p3406_p1)
}
  0x2a   :  { %83 = dma.hbm_to_vmem [thread:$0]  %s4381_s7, 256, %s78_s24, [#allocation9], %s3577_s1, %s3577_s1, %s3578_s20  }
  0x2b   :  { %s3410_s23 = scalar_lea.hbm %s4383_s9, 16 }
  0x2c   :  { %p3411_p2 = scmp.ne.s32.totalorder %s4383_s9, %s3410_s23  ;;  %p3414_p3 = scmp.lt.u32.totalorder %s3410_s23, %s4383_s9 }
  0x2e   :  { %p3416_p4 = pnand %p3414_p3, %p3411_p2 }
  0x30   :  { %3419 = shalt.err (!%p3416_p4)
}
  0x31   :  { %s3420_s30 = scalar_lea.vmem %s103_s27, 16  ;;  %s3424_s18 = scalar_lea.vmem %s103_s27, 32 }
  0x32   :  { %p3421_p5 = scmp.ne.s32.totalorder %s103_s27, %s3420_s30  ;;  %p3425_p6 = scmp.lt.s32.totalorder %s103_s27, %s103_s27 }
  0x33   :  { %p3426_p7 = scmp.lt.s32.totalorder %s3424_s18, %s3420_s30 }
  0x35   :  { %p3427_p8 = por %p3426_p7, %p3425_p6 }
  0x37   :  { %p3428_p9 = pnand %p3427_p8, %p3421_p5 }
  0x39   :  { %3431 = shalt.err (!%p3428_p9)
}
  0x3a   :  { %105 = dma.hbm_to_vmem [thread:$0]  %s4383_s9, 16, %s103_s27, [#allocation12]  }
  0x3b   :  { %s3581_s19 = smov [#allocation2]   ;;  %s3432_s22 = scalar_lea.hbm %s4377_s3, 32 }
  0x3c   :  { %s39_s4 = sshll.u32 %s3581_s19, 4  ;;  %p3433_p10 = scmp.ne.s32.totalorder %s4377_s3, %s3432_s22  ;;  %s40_s4 = int_to_ptr.vmem [resolvable:$true] %s39_s4 }
  0x3d   :  { %p3436_p11 = scmp.lt.u32.totalorder %s3432_s22, %s4377_s3 }
  0x3f   :  { %p3438_p12 = pnand %p3436_p11, %p3433_p10 }
  0x41   :  { %3441 = shalt.err (!%p3438_p12)
}
  0x42   :  { %s3442_s29 = scalar_lea.vmem %s40_s4, 32  ;;  %p3447_p0 = scmp.lt.s32.totalorder %s40_s4, %s40_s4 }
  0x43   :  { %p3443_p13 = scmp.ne.s32.totalorder %s40_s4, %s3442_s29  ;;  %p3448_p1 = scmp.lt.s32.totalorder %s3442_s29, %s3442_s29 }
  0x45   :  { %p3449_p2 = por %p3448_p1, %p3447_p0 }
  0x47   :  { %p3450_p3 = pnand %p3449_p2, %p3443_p13 }
  0x49   :  { %3453 = shalt.err (!%p3450_p3)
}
  0x4a   :  { %s3582_s9 = smov 16   ;;  %s3583_s27 = smov 1  }
  0x4b   :  { %45 = dma.hbm_to_vmem [thread:$0]  %s4377_s3, 32, %s40_s4, [#allocation3], %s3582_s9, %s3582_s9, %s3583_s27  }
  0x4c   :  { %s3584_s18 = smov [#allocation7]   ;;  %s3585_s24 = smov [#allocation10]  }
  0x4d   :  { %s65_s7 = sshll.u32 %s3584_s18, 4  ;;  %s89_s19 = sshll.u32 %s3585_s24, 4  ;;  %s66_s7 = int_to_ptr.vmem [resolvable:$true] %s65_s7  ;;  %s3744_s19 = int_to_ptr.vmem [resolvable:$true] %s89_s19 }
  0x4e   :  { %s3454_s22 = scalar_lea.hbm %s4380_s6, 256 }
  0x4f   :  { %p3455_p4 = scmp.ne.s32.totalorder %s4380_s6, %s3454_s22  ;;  %p3458_p5 = scmp.lt.u32.totalorder %s3454_s22, %s4380_s6 }
  0x51   :  { %p3460_p6 = pnand %p3458_p5, %p3455_p4 }
  0x53   :  { %3463 = shalt.err (!%p3460_p6)
}
  0x54   :  { %s3464_s3 = scalar_lea.vmem %s66_s7, 256  ;;  %p3469_p8 = scmp.lt.s32.totalorder %s66_s7, %s66_s7 }
  0x55   :  { %p3465_p7 = scmp.ne.s32.totalorder %s66_s7, %s3464_s3  ;;  %p3470_p9 = scmp.lt.s32.totalorder %s3464_s3, %s3464_s3 }
  0x57   :  { %p3471_p10 = por %p3470_p9, %p3469_p8 }
  0x59   :  { %p3472_p11 = pnand %p3471_p10, %p3465_p7 }
  0x5b   :  { %3475 = shalt.err (!%p3472_p11)
}
  0x5c   :  { %71 = dma.hbm_to_vmem [thread:$0]  %s4380_s6, 256, %s66_s7, [#allocation6], %s3577_s1, %s3577_s1, %s3578_s20  }
  0x5d   :  { %s3476_s30 = scalar_lea.hbm %s4382_s8, 256 }
  0x5e   :  { %p3477_p12 = scmp.ne.s32.totalorder %s4382_s8, %s3476_s30  ;;  %p3480_p13 = scmp.lt.u32.totalorder %s3476_s30, %s4382_s8 }
  0x60   :  { %p3482_p0 = pnand %p3480_p13, %p3477_p12 }
  0x62   :  { %3485 = shalt.err (!%p3482_p0)
}
  0x63   :  { %s3486_s22 = scalar_lea.vmem %s3744_s19, 256  ;;  %p3491_p2 = scmp.lt.s32.totalorder %s3744_s19, %s3744_s19 }
  0x64   :  { %p3487_p1 = scmp.ne.s32.totalorder %s3744_s19, %s3486_s22  ;;  %p3492_p3 = scmp.lt.s32.totalorder %s3486_s22, %s3486_s22 }
  0x66   :  { %p3493_p4 = por %p3492_p3, %p3491_p2 }
  0x68   :  { %p3494_p5 = pnand %p3493_p4, %p3487_p1 }
  0x6a   :  { %3497 = shalt.err (!%p3494_p5)
}
  0x6b   :  { %95 = dma.hbm_to_vmem [thread:$0]  %s4382_s8, 256, %s3744_s19, [#allocation9], %s3577_s1, %s3577_s1, %s3578_s20  }
  0x6c   :  { %s3586_s17 = smov [#allocation13]   ;;  %s3587_s26 = smov [#allocation14]  }
  0x6d   :  { %s114_s23 = sshll.u32 %s3586_s17, 4  ;;  %s123_s28 = sshll.u32 %s3587_s26, 4  ;;  %s115_s23 = int_to_ptr.vmem [resolvable:$true] %s114_s23  ;;  %s3781_s28 = int_to_ptr.vmem [resolvable:$true] %s123_s28 }
  0x6e   :  { %s3498_s29 = scalar_lea.hbm %s4385_s11, 16 }
  0x6f   :  { %p3499_p6 = scmp.ne.s32.totalorder %s4385_s11, %s3498_s29  ;;  %p3502_p7 = scmp.lt.u32.totalorder %s3498_s29, %s4385_s11 }
  0x71   :  { %p3504_p8 = pnand %p3502_p7, %p3499_p6 }
  0x73   :  { %3507 = shalt.err (!%p3504_p8)
}
  0x74   :  { %s3508_s8 = scalar_lea.vmem %s115_s23, 16  ;;  %s3512_s19 = scalar_lea.vmem %s115_s23, 32 }
  0x75   :  { %p3509_p9 = scmp.ne.s32.totalorder %s115_s23, %s3508_s8  ;;  %p3513_p10 = scmp.lt.s32.totalorder %s115_s23, %s115_s23 }
  0x76   :  { %p3514_p11 = scmp.lt.s32.totalorder %s3512_s19, %s3508_s8 }
  0x78   :  { %p3515_p12 = por %p3514_p11, %p3513_p10 }
  0x7a   :  { %p3516_p13 = pnand %p3515_p12, %p3509_p9 }
  0x7c   :  { %3519 = shalt.err (!%p3516_p13)
}
  0x7d   :  { %117 = dma.hbm_to_vmem [thread:$0]  %s4385_s11, 16, %s115_s23, [#allocation12]  }
  0x7e   :  { %s3520_s6 = scalar_lea.hbm %s4386_s12, 256 }
  0x7f   :  { %p3521_p0 = scmp.ne.s32.totalorder %s4386_s12, %s3520_s6  ;;  %p3524_p1 = scmp.lt.u32.totalorder %s3520_s6, %s4386_s12 }
  0x81   :  { %p3526_p2 = pnand %p3524_p1, %p3521_p0 }
  0x83   :  { %3529 = shalt.err (!%p3526_p2)
}
  0x84   :  { %s3530_s4 = scalar_lea.vmem %s3781_s28, 256  ;;  %p3535_p4 = scmp.lt.s32.totalorder %s3781_s28, %s3781_s28 }
  0x85   :  { %p3531_p3 = scmp.ne.s32.totalorder %s3781_s28, %s3530_s4  ;;  %p3536_p5 = scmp.lt.s32.totalorder %s3530_s4, %s3530_s4 }
  0x87   :  { %p3537_p6 = por %p3536_p5, %p3535_p4 }
  0x89   :  { %p3538_p7 = pnand %p3537_p6, %p3531_p3 }
  0x8b   :  { %3541 = shalt.err (!%p3538_p7)
}
  0x8c   :  { %129 = dma.hbm_to_vmem [thread:$0]  %s4386_s12, 256, %s3781_s28, [#allocation15], %s3577_s1, %s3577_s1, %s3578_s20  }
  0x8d   :  { %3564 = dma.done.wait [#allocation3], 32  }
  0x8e   :  { %3565 = vsyncadd [#allocation3], 4294967264 }
  0x8f   :  { %3566 = dma.done.wait [#allocation6], 512  }
  0x90   :  { %3567 = vsyncadd [#allocation6], 4294966784 }
  0x91   :  { %3568 = dma.done.wait [#allocation9], 512  }
  0x92   :  { %3569 = vsyncadd [#allocation9], 4294966784 }
  0x93   :  { %3570 = dma.done.wait [#allocation12], 32  }
  0x94   :  { %3571 = vsyncadd [#allocation12], 4294967264 }
  0x95   :  { %3572 = dma.done.wait [#allocation15], 256  }
  0x96   :  { %3573 = vsyncadd [#allocation15], 4294967040  ;;  %vm172_vm0 = vcmask 261120   ;;  %s4398_s0 = sld [smem:[#allocation23_spill]]  ;;  %v3260_v14 = vld [vmem:[#allocation5] sm:$0xff]   ;;  %v3588_v15 = vmov 0.0   ;;  %v212_v23 = vlaneseq }
  0x97   :  { %2911 = vmatprep.subr.bf16.mxu1 %v3588_v15  ;;  %vm3589_vm1 = vmmov 0   ;;  %v3261_v16 = vld [vmem:[#allocation5 + $0x8] sm:$0xff]   ;;  %2925 = vmatprep.subr.bf16.mxu0 %v3588_v15  ;;  %v3847_v36 = vld [vmem:[%s4389_s15] sm:$0x7]  ;;  %s3590_s25 = smov 112   ;;  %s3591_s21 = smov 120  }
  0x98   :  { %2915 = vmatprep.mubr.msk.bf16.mxu1 %vm3589_vm1, %v3588_v15  ;;  %2912 = vmatpush3.bf16.msra.mxu1 %v3260_v14  ;;  %v3841_v30 = vshrl.u32 %v212_v23, 7  ;;  %v3853_v39 = vld [vmem:[%s4390_s16] sm:$0x7]  ;;  %s3592_s22 = smov 104   ;;  %s3593_s6 = smov 96   ;;  %vm327_vm6 = vcmask 64512  }
  0x99   :  { %2913 = vmatprep.subr.bf16.mxu1 %v3588_v15  ;;  %2927 = vmatprep.mubr.msk.bf16.mxu0 %vm3589_vm1, %v3588_v15  ;;  %v2763_v49 = vld [vmem:[%s4379_s5] ss:$0 sm:$0xff]  ;;  %vm834_vm7 = vcmask 1043456   ;;  %s3595_s3 = smov 24   ;;  %vm1240_vm8 = vcmask 130048   ;;  %vm1243_vm9 = vcmask 195584  }
  0x9a   :  { %v214_v35 = vsub.s32 0, %v3841_v30  ;;  %s4399_s23 = sld [smem:[#allocation24_spill]] }
  0x9c   :  { %v3818_v0 = vld [vmem:[%s4398_s0] sm:$0xff]  ;;  %v3823_v1 = vld [vmem:[%s4398_s0 + $0x8] sm:$0xff]  ;;  %2914 = vmatpush3.bf16.msra.mxu1 %v3261_v16  ;;  %v215_v37 = vrot.slane %v3847_v36, %v214_v35  ;;  %v223_v41 = vrot.slane %v3853_v39, %v214_v35 }
  0x9d   :  { %v173_v2 = vsel %vm172_vm0, %v3818_v0, 0.0  ;;  %v176_v3 = vsel %vm172_vm0, %v3823_v1, 0.0  ;;  %2919 = vmatprep.subr.bf16.mxu1 %v3588_v15 }
  0x9e   :  { %174 = vadd.xlane.f32.xlu0 %v173_v2 }
  0xa2   :  { %177 = vadd.xlane.f32.xlu0 %v176_v3 }
 0x12b   :  { %v175_v4 = vpop.xlane.xlu0 %174 }
 0x12c   :  { %v180_v5 = vmul.f32 0.03125, %v175_v4 }
 0x12e   :  { %v182_v6 = vsub.f32 %v3818_v0, %v180_v5 }
 0x12f   :  { %v178_v7 = vpop.xlane.xlu0 %177 }
 0x130   :  { %v181_v8 = vmul.f32 0.03125, %v178_v7  ;;  %v184_v9 = vmul.f32 %v182_v6, %v182_v6  ;;  %v216_v40 = vmul.f32 %v215_v37, %v182_v6 }
 0x132   :  { %v183_v10 = vsub.f32 %v3823_v1, %v181_v8  ;;  %v186_v11 = vsel %vm172_vm0, %v184_v9, 0.0 }
 0x133   :  { %187 = vadd.xlane.f32.xlu1 %v186_v11 }
 0x134   :  { %v185_v12 = vmul.f32 %v183_v10, %v183_v10  ;;  %v217_v42 = vmul.f32 %v215_v37, %v183_v10 }
 0x136   :  { %v189_v13 = vsel %vm172_vm0, %v185_v12, 0.0 }
 0x137   :  { %190 = vadd.xlane.f32.xlu1 %v189_v13 }
 0x1c0   :  { %v188_v17 = vpop.xlane.xlu1 %187 }
 0x1c1   :  { %v192_v18 = vmul.f32 0.032258064, %v188_v17 }
 0x1c3   :  { %3276 = vrsqrt.f32 %v192_v18  ;;  %vm196_vm2 = vcmp.eq.f32.partialorder %v192_v18, inf  ;;  %v199_v24 = vand.u32 2147483648, %v192_v18  ;;  %vm198_vm3 = vcmp.eq.f32.partialorder %v192_v18, 0.0 }
 0x1c4   :  { %v191_v19 = vpop.xlane.xlu1 %190 }
 0x1c5   :  { %v193_v20 = vmul.f32 0.032258064, %v191_v19 }
 0x1c7   :  { %3278 = vrsqrt.f32 %v193_v20  ;;  %vm203_vm4 = vcmp.eq.f32.partialorder %v193_v20, inf  ;;  %v206_v31 = vand.u32 2147483648, %v193_v20  ;;  %vm205_vm5 = vcmp.eq.f32.partialorder %v193_v20, 0.0 }
 0x1cd   :  { %v3277_v21 = vpop.eup %3276 }
 0x1ce   :  { %v195_v22 = vmul.f32 %v3277_v21, %v192_v18 }
 0x1d0   :  { %v197_v25 = vsel %vm196_vm2, %v192_v18, %v195_v22 }
 0x1d1   :  { %v3279_v26 = vpop.eup %3278  ;;  %v200_v27 = vsel %vm198_vm3, %v199_v24, %v197_v25  ;;  %vm2693_vm3 = vcmask 523264  }
 0x1d2   :  { %v208_v28 = vadd.f32 1e-06, %v200_v27  ;;  %v202_v29 = vmul.f32 %v3279_v26, %v193_v20 }
 0x1d4   :  { %3280 = vrcp.f32 %v208_v28  ;;  %v204_v32 = vsel %vm203_vm4, %v193_v20, %v202_v29 }
 0x1d5   :  { %v207_v33 = vsel %vm205_vm5, %v206_v31, %v204_v32 }
 0x1d6   :  { %v209_v34 = vadd.f32 1e-06, %v207_v33  ;;  %v295_v33 = vld [vmem:[%s4376_s2 + $0x8] sm:$0xff] }
 0x1d8   :  { %3282 = vrcp.f32 %v209_v34 }
 0x1de   :  { %v3281_v38 = vpop.eup %3280 }
 0x1df   :  { %v218_v43 = vmul.f32 %v3281_v38, %v216_v40 }
 0x1e1   :  { %v224_v46 = vadd.f32 %v223_v41, %v218_v43 }
 0x1e2   :  { %v3283_v44 = vpop.eup %3282 }
 0x1e3   :  { %v219_v45 = vmul.f32 %v3283_v44, %v217_v42  ;;  %v294_v42 = vld [vmem:[%s4376_s2] sm:$0xff]  ;;  %s3594_s2 = smov 8  }
 0x1e5   :  { %v225_v47 = vadd.f32 %v223_v41, %v219_v45 }
 0x1e7   :  { %v231_v48 = vpack.c.bf16 %v225_v47, %v224_v46 }
 0x1e9   :  { %2916 = vmatmul.mubr.msk.bf16.vlgmr.msra.gmra.mrb[0].mxu1 %vm172_vm0, %v231_v48 }
 0x1ea   :  { %2921 = vmatprep.mubr.msk.bf16.mxu1 %vm3589_vm1, %v3588_v15 }
 0x2bc   :  { %v287_v50 = vpop.f32.mrb[0].mxu1 }
 0x2bd   :  { %v2917_v51 = vpop.f32.mrb[1].mxu1  ;;  %v288_v53 = vadd.f32 %v2763_v49, %v287_v50 }
 0x2be   :  { %v290_v52 = vpop.f32.mrb[2].mxu1 }
 0x2bf   :  { %v291_v54 = vadd.f32 %v2763_v49, %v290_v52  ;;  %v2918_v55 = vpop.f32.mrb[3].mxu1  ;;  %v316_v58 = vpack.c.bf16 %v288_v53, %v288_v53 }
 0x2c1   :  { %v3190_v56 = vpack.i.bf16 %v291_v54, %v288_v53  ;;  %v3864_v57 = vpack.c.bf16 %v291_v54, %v291_v54 }
 0x2c3   :  { %3191 = vrot.lane.b32.xlu1 %v3190_v56, %s3590_s25  ;;  %3186 = vrot.lane.b32.xlu0 %v3190_v56, %s3591_s21 }
 0x2c7   :  { %3196 = vrot.lane.b32.xlu1 %v3190_v56, %s3592_s22  ;;  %375 = vrot.lane.b32.xlu0 %v3864_v57, %s3593_s6 }
 0x2cb   :  { %325 = vrot.lane.b32.xlu1 %v316_v58, %s3593_s6 }
 0x335   :  { %v3192_v59 = vpop.permute.xlu1 %3191  ;;  %v3187_v60 = vpop.permute.xlu0 %3186 }
 0x336   :  { %v3189_v61 = vunpack.i.h.bf16 %v3187_v60  ;;  %v3188_v62 = vunpack.i.l.bf16 %v3187_v60  ;;  %v3194_v63 = vunpack.i.h.bf16 %v3192_v59  ;;  %v3193_v2 = vunpack.i.l.bf16 %v3192_v59 }
 0x338   :  { %v3870_v3 = vpack.c.bf16 %v3189_v61, %v3189_v61  ;;  %v3872_v4 = vpack.c.bf16 %v3188_v62, %v3188_v62  ;;  %v3879_v8 = vpack.c.bf16 %v3194_v63, %v3194_v63  ;;  %v3881_v9 = vpack.c.bf16 %v3193_v2, %v3193_v2 }
 0x339   :  { %v3197_v5 = vpop.permute.xlu1 %3196  ;;  %v376_v6 = vpop.permute.xlu0 %375 }
 0x33a   :  { %424 = vrot.lane.b32.xlu1 %v3872_v4, %s3593_s6  ;;  %473 = vrot.lane.b32.xlu0 %v3870_v3, %s3593_s6  ;;  %v381_v7 = vsel %vm327_vm6, %v376_v6, 0  ;;  %v3199_v10 = vunpack.i.h.bf16 %v3197_v5  ;;  %v3198_v11 = vunpack.i.l.bf16 %v3197_v5 }
 0x33b   :  { %2926 = vmatpush3.bf16.xpose.msra.mxu0 %v381_v7 }
 0x33c   :  { %2937 = vmatprep.subr.bf16.mxu0 %v3588_v15  ;;  %v3889_v14 = vpack.c.bf16 %v3199_v10, %v3199_v10  ;;  %v3891_v16 = vpack.c.bf16 %v3198_v11, %v3198_v11 }
 0x33d   :  { %v326_v12 = vpop.permute.xlu1 %325 }
 0x33e   :  { %v332_v13 = vsel %vm327_vm6, %v326_v12, 0  ;;  %522 = vrot.lane.b32.xlu1 %v3881_v9, %s3593_s6  ;;  %571 = vrot.lane.b32.xlu0 %v3879_v8, %s3593_s6 }
 0x33f   :  { %2920 = vmatpush3.bf16.xpose.msra.mxu1 %v332_v13 }
 0x340   :  { %2931 = vmatprep.subr.bf16.mxu1 %v3588_v15 }
 0x342   :  { %620 = vrot.lane.b32.xlu1 %v3891_v16, %s3593_s6  ;;  %669 = vrot.lane.b32.xlu0 %v3889_v14, %s3593_s6 }
 0x343   :  { %2928 = vmatmul.mubr.msk.bf16.vlgmr.msra.gmra.mrb[0].mxu0 %vm327_vm6, %v3864_v57 }
 0x344   :  { %2939 = vmatprep.mubr.msk.bf16.mxu0 %vm3589_vm1, %v3588_v15 }
 0x346   :  { %2922 = vmatmul.mubr.msk.bf16.vlgmr.msra.gmra.mrb[4].mxu1 %vm327_vm6, %v316_v58  ;;  %829 = vrot.lane.b32.xlu1 %v316_v58, %s3577_s1 }
 0x347   :  { %2933 = vmatprep.mubr.msk.bf16.mxu1 %vm3589_vm1, %v3588_v15 }
 0x3ac   :  { %v425_v17 = vpop.permute.xlu1 %424  ;;  %v474_v18 = vpop.permute.xlu0 %473 }
 0x3ad   :  { %v430_v19 = vsel %vm327_vm6, %v425_v17, 0  ;;  %v479_v20 = vsel %vm327_vm6, %v474_v18, 0 }
 0x3ae   :  { %2932 = vmatpush3.bf16.xpose.msra.mxu1 %v430_v19  ;;  %2938 = vmatpush3.bf16.xpose.msra.mxu0 %v479_v20 }
 0x3af   :  { %2943 = vmatprep.subr.bf16.mxu1 %v3588_v15  ;;  %2949 = vmatprep.subr.bf16.mxu0 %v3588_v15 }
 0x3b0   :  { %v523_v21 = vpop.permute.xlu1 %522  ;;  %v572_v22 = vpop.permute.xlu0 %571 }
 0x3b1   :  { %v528_v23 = vsel %vm327_vm6, %v523_v21, 0  ;;  %v577_v24 = vsel %vm327_vm6, %v572_v22, 0 }
 0x3b4   :  { %v621_v25 = vpop.permute.xlu1 %620  ;;  %v670_v26 = vpop.permute.xlu0 %669 }
 0x3b5   :  { %2934 = vmatmul.mubr.msk.bf16.vlgmr.msra.gmra.mrb[8].mxu1 %vm327_vm6, %v3872_v4  ;;  %2940 = vmatmul.mubr.msk.bf16.vlgmr.msra.gmra.mrb[4].mxu0 %vm327_vm6, %v3870_v3  ;;  %v626_v27 = vsel %vm327_vm6, %v621_v25, 0  ;;  %v675_v28 = vsel %vm327_vm6, %v670_v26, 0 }
 0x3b6   :  { %2944 = vmatpush3.bf16.xpose.msra.mxu1 %v528_v23  ;;  %2950 = vmatpush3.bf16.xpose.msra.mxu0 %v577_v24 }
 0x3b7   :  { %2945 = vmatprep.mubr.msk.bf16.mxu1 %vm3589_vm1, %v3588_v15  ;;  %2951 = vmatprep.mubr.msk.bf16.mxu0 %vm3589_vm1, %v3588_v15 }
 0x3b8   :  { %2955 = vmatprep.subr.bf16.mxu1 %v3588_v15  ;;  %2961 = vmatprep.subr.bf16.mxu0 %v3588_v15  ;;  %v830_v29 = vpop.permute.xlu1 %829 }
 0x3b9   :  { %v836_v31 = vsel %vm834_vm7, %v830_v29, 0 }
 0x3bd   :  { %2946 = vmatmul.mubr.msk.bf16.vlgmr.msra.gmra.mrb[12].mxu1 %vm327_vm6, %v3881_v9  ;;  %2952 = vmatmul.mubr.msk.bf16.vlgmr.msra.gmra.mrb[8].mxu0 %vm327_vm6, %v3879_v8 }
 0x3be   :  { %2956 = vmatpush3.bf16.xpose.msra.mxu1 %v626_v27  ;;  %2962 = vmatpush3.bf16.xpose.msra.mxu0 %v675_v28 }
 0x3bf   :  { %2957 = vmatprep.mubr.msk.bf16.mxu1 %vm3589_vm1, %v3588_v15  ;;  %2963 = vmatprep.mubr.msk.bf16.mxu0 %vm3589_vm1, %v3588_v15 }
 0x3c0   :  { %2967 = vmatprep.subr.bf16.mxu1 %v3588_v15  ;;  %2973 = vmatprep.subr.bf16.mxu0 %v3588_v15 }
 0x3c5   :  { %2958 = vmatmul.mubr.msk.bf16.vlgmr.msra.gmra.mrb[16].mxu1 %vm327_vm6, %v3891_v16  ;;  %2964 = vmatmul.mubr.msk.bf16.vlgmr.msra.gmra.mrb[12].mxu0 %vm327_vm6, %v3889_v14 }
 0x3c6   :  { %2968 = vmatpush3.bf16.msra.mxu1 %v836_v31  ;;  %2975 = vmatprep.mubr.msk.bf16.mxu0 %vm3589_vm1, %v3588_v15 }
 0x3c7   :  { %2969 = vmatprep.mubr.msk.bf16.mxu1 %vm3589_vm1, %v3588_v15  ;;  %2979 = vmatprep.subr.bf16.mxu1 %v3588_v15 }
 0x416   :  { %v417_v32 = vpop.f32.mrb[0].mxu0 }
 0x417   :  { %v718_v34 = vmul.f32 0.35355338, %v417_v32  ;;  %v2929_v35 = vpop.f32.mrb[1].mxu0 }
 0x418   :  { %v420_v37 = vpop.f32.mrb[2].mxu0 }
 0x419   :  { %v2930_v38 = vpop.f32.mrb[3].mxu0  ;;  %v368_v40 = vpop.f32.mrb[4].mxu1  ;;  %v3947_v41 = vadd.f32 %v718_v34, %v295_v33 }
 0x41a   :  { %v717_v43 = vmul.f32 0.35355338, %v368_v40  ;;  %v2923_v44 = vpop.f32.mrb[5].mxu1 }
 0x41b   :  { %v736_v45 = vsel %vm327_vm6, %v3947_v41, -inf  ;;  %v371_v46 = vpop.f32.mrb[6].mxu1 }
 0x41c   :  { %737 = vmax.xlane.f32.xlu0 %v736_v45  ;;  %v2924_v47 = vpop.f32.mrb[7].mxu1  ;;  %v725_v48 = vadd.f32 %v717_v43, %v294_v42 }
 0x41e   :  { %v733_v49 = vsel %vm327_vm6, %v725_v48, -inf }
 0x41f   :  { %734 = vmax.xlane.f32.xlu1 %v733_v49 }
 0x488   :  { %v466_v50 = vpop.f32.mrb[8].mxu1  ;;  %v515_v51 = vpop.f32.mrb[4].mxu0 }
 0x489   :  { %v719_v52 = vmul.f32 0.35355338, %v466_v50  ;;  %v720_v53 = vmul.f32 0.35355338, %v515_v51  ;;  %v2935_v54 = vpop.f32.mrb[9].mxu1  ;;  %v2941_v55 = vpop.f32.mrb[5].mxu0 }
 0x48a   :  { %v469_v56 = vpop.f32.mrb[10].mxu1  ;;  %v518_v58 = vpop.f32.mrb[6].mxu0 }
 0x48b   :  { %v2936_v59 = vpop.f32.mrb[11].mxu1  ;;  %v2942_v60 = vpop.f32.mrb[7].mxu0  ;;  %v727_v61 = vadd.f32 %v719_v52, %v294_v42  ;;  %v728_v62 = vadd.f32 %v720_v53, %v295_v33 }
 0x48d   :  { %v739_v63 = vsel %vm327_vm6, %v727_v61, -inf  ;;  %v742_v6 = vsel %vm327_vm6, %v728_v62, -inf }
 0x48e   :  { %740 = vmax.xlane.f32.xlu0 %v739_v63 }
 0x490   :  { %v564_v2 = vpop.f32.mrb[12].mxu1  ;;  %v613_v5 = vpop.f32.mrb[8].mxu0 }
 0x491   :  { %v721_v7 = vmul.f32 0.35355338, %v564_v2  ;;  %v722_v10 = vmul.f32 0.35355338, %v613_v5  ;;  %v2947_v11 = vpop.f32.mrb[13].mxu1  ;;  %v2953_v12 = vpop.f32.mrb[9].mxu0 }
 0x492   :  { %v616_v13 = vpop.f32.mrb[10].mxu0  ;;  %743 = vmax.xlane.f32.xlu0 %v742_v6  ;;  %v567_v17 = vpop.f32.mrb[14].mxu1 }
 0x493   :  { %v2948_v18 = vpop.f32.mrb[15].mxu1  ;;  %v2954_v19 = vpop.f32.mrb[11].mxu0  ;;  %v3957_v20 = vadd.f32 %v722_v10, %v295_v33  ;;  %v729_v21 = vadd.f32 %v721_v7, %v294_v42 }
 0x495   :  { %v748_v22 = vsel %vm327_vm6, %v3957_v20, -inf  ;;  %v745_v23 = vsel %vm327_vm6, %v729_v21, -inf }
 0x496   :  { %749 = vmax.xlane.f32.xlu0 %v748_v22  ;;  %746 = vmax.xlane.f32.xlu1 %v745_v23 }
 0x498   :  { %v662_v24 = vpop.f32.mrb[16].mxu1  ;;  %v711_v25 = vpop.f32.mrb[12].mxu0 }
 0x499   :  { %v723_v26 = vmul.f32 0.35355338, %v662_v24  ;;  %v724_v27 = vmul.f32 0.35355338, %v711_v25  ;;  %v2959_v28 = vpop.f32.mrb[17].mxu1  ;;  %v2965_v29 = vpop.f32.mrb[13].mxu0 }
 0x49a   :  { %v665_v31 = vpop.f32.mrb[18].mxu1  ;;  %v714_v32 = vpop.f32.mrb[14].mxu0 }
 0x49b   :  { %v2960_v34 = vpop.f32.mrb[19].mxu1  ;;  %v2966_v35 = vpop.f32.mrb[15].mxu0  ;;  %v3962_v37 = vadd.f32 %v724_v27, %v295_v33  ;;  %v731_v38 = vadd.f32 %v723_v26, %v294_v42 }
 0x49d   :  { %v754_v40 = vsel %vm327_vm6, %v3962_v37, -inf  ;;  %v751_v43 = vsel %vm327_vm6, %v731_v38, -inf }
 0x49e   :  { %755 = vmax.xlane.f32.xlu0 %v754_v40  ;;  %752 = vmax.xlane.f32.xlu1 %v751_v43 }
 0x4a9   :  { %v738_v44 = vpop.xlane.xlu0 %737 }
 0x4aa   :  { %v758_v33 = vsub.f32 %v3947_v41, %v738_v44 }
 0x4ac   :  { %v735_v42 = vpop.xlane.xlu1 %734  ;;  %v767_v45 = vmul.f32 1.442695, %v758_v33 }
 0x4ad   :  { %v757_v46 = vsub.f32 %v725_v48, %v735_v42 }
 0x4ae   :  { %3284 = vpow2.f32 %v767_v45 }
 0x4af   :  { %926 = vrot.lane.b32.xlu1 %v3872_v4, %s3577_s1  ;;  %v765_v47 = vmul.f32 1.442695, %v757_v46 }
 0x4b1   :  { %3286 = vpow2.f32 %v765_v47 }
 0x4b3   :  { %974 = vrot.lane.b32.xlu1 %v3870_v3, %s3577_s1 }
 0x4b4   :  { %878 = vrot.lane.b32.xlu0 %v3864_v57, %s3577_s1 }
 0x4b8   :  { %v3285_v49 = vpop.eup %3284 }
 0x4b9   :  { %v784_v50 = vsel %vm327_vm6, %v3285_v49, 0.0 }
 0x4bb   :  { %v3975_v51 = vpop.eup %3286 }
 0x4bc   :  { %v781_v3 = vsel %vm327_vm6, %v3975_v51, 0.0 }
 0x4d3   :  { %785 = vadd.xlane.f32.xlu0 %v784_v50 }
 0x4d7   :  { %782 = vadd.xlane.f32.xlu1 %v781_v3 }
 0x4e8   :  { %1022 = vrot.lane.b32.xlu1 %v3881_v9, %s3577_s1 }
 0x51b   :  { %v741_v57 = vpop.xlane.xlu0 %740 }
 0x51c   :  { %v759_v4 = vsub.f32 %v727_v61, %v741_v57 }
 0x51e   :  { %v769_v41 = vmul.f32 1.442695, %v759_v4 }
 0x51f   :  { %v744_v48 = vpop.xlane.xlu0 %743 }
 0x520   :  { %3288 = vpow2.f32 %v769_v41  ;;  %v760_v52 = vsub.f32 %v728_v62, %v744_v48 }
 0x522   :  { %v771_v53 = vmul.f32 1.442695, %v760_v52 }
 0x523   :  { %v747_v54 = vpop.xlane.xlu1 %746  ;;  %v750_v58 = vpop.xlane.xlu0 %749 }
 0x524   :  { %3290 = vpow2.f32 %v771_v53  ;;  %v761_v55 = vsub.f32 %v729_v21, %v747_v54  ;;  %v762_v17 = vsub.f32 %v3957_v20, %v750_v58 }
 0x526   :  { %v773_v56 = vmul.f32 1.442695, %v761_v55  ;;  %v775_v18 = vmul.f32 1.442695, %v762_v17 }
 0x528   :  { %3292 = vpow2.f32 %v773_v56 }
 0x52a   :  { %v3981_v59 = vpop.eup %3288 }
 0x52b   :  { %v756_v60 = vpop.xlane.xlu0 %755  ;;  %v753_v63 = vpop.xlane.xlu1 %752  ;;  %v787_v9 = vsel %vm327_vm6, %v3981_v59, 0.0 }
 0x52c   :  { %v763_v2 = vsub.f32 %v731_v38, %v753_v63  ;;  %788 = vadd.xlane.f32.xlu1 %v787_v9  ;;  %v764_v19 = vsub.f32 %v3962_v37, %v756_v60 }
 0x52e   :  { %v3985_v61 = vpop.eup %3290  ;;  %v777_v5 = vmul.f32 1.442695, %v763_v2  ;;  %v779_v21 = vmul.f32 1.442695, %v764_v19 }
 0x52f   :  { %v879_v62 = vpop.permute.xlu0 %878  ;;  %v790_v6 = vsel %vm327_vm6, %v3985_v61, 0.0  ;;  %v927_v22 = vpop.permute.xlu1 %926 }
 0x530   :  { %v884_v7 = vsel %vm834_vm7, %v879_v62, 0  ;;  %791 = vadd.xlane.f32.xlu0 %v790_v6  ;;  %3294 = vpow2.f32 %v777_v5  ;;  %v932_v37 = vsel %vm834_vm7, %v927_v22, 0 }
 0x531   :  { %2974 = vmatpush3.bf16.msra.mxu0 %v884_v7  ;;  %3296 = vpow2.f32 %v775_v18 }
 0x532   :  { %2985 = vmatprep.subr.bf16.mxu0 %v3588_v15  ;;  %v3991_v10 = vpop.eup %3292  ;;  %3298 = vpow2.f32 %v779_v21 }
 0x533   :  { %v793_v11 = vsel %vm327_vm6, %v3991_v10, 0.0  ;;  %v975_v23 = vpop.permute.xlu1 %974 }
 0x534   :  { %794 = vadd.xlane.f32.xlu1 %v793_v11  ;;  %v980_v32 = vsel %vm834_vm7, %v975_v23, 0 }
 0x53a   :  { %v3995_v12 = vpop.eup %3294 }
 0x53b   :  { %v799_v13 = vsel %vm327_vm6, %v3995_v12, 0.0  ;;  %v4005_v25 = vpop.eup %3296 }
 0x53c   :  { %800 = vadd.xlane.f32.xlu1 %v799_v13  ;;  %v4009_v27 = vpop.eup %3298 }
 0x546   :  { %1070 = vrot.lane.b32.xlu0 %v3879_v8, %s3577_s1  ;;  %v796_v8 = vsel %vm327_vm6, %v4005_v25, 0.0 }
 0x54d   :  { %1118 = vrot.lane.b32.xlu1 %v3891_v16, %s3577_s1  ;;  %v802_v16 = vsel %vm327_vm6, %v4009_v27, 0.0 }
 0x560   :  { %v786_v24 = vpop.xlane.xlu0 %785 }
 0x561   :  { %3300 = vrcp.f32 %v786_v24 }
 0x564   :  { %v783_v26 = vpop.xlane.xlu1 %782 }
 0x565   :  { %3302 = vrcp.f32 %v783_v26  ;;  %797 = vadd.xlane.f32.xlu0 %v796_v8 }
 0x568   :  { %v1023_v38 = vpop.permute.xlu1 %1022 }
 0x569   :  { %803 = vadd.xlane.f32.xlu0 %v802_v16  ;;  %v1028_v47 = vsel %vm834_vm7, %v1023_v38, 0 }
 0x56b   :  { %v3301_v20 = vpop.eup %3300 }
 0x56c   :  { %v814_v28 = vmul.f32 %v3301_v20, %v3285_v49 }
 0x56e   :  { %v822_v29 = vpack.c.bf16 %v814_v28, %v814_v28 }
 0x56f   :  { %v3303_v31 = vpop.eup %3302 }
 0x570   :  { %v813_v34 = vmul.f32 %v3303_v31, %v3975_v51  ;;  %2976 = vmatmul.mubr.msk.bf16.vlgmr.msra.gmra.mrb[16].mxu0 %vm327_vm6, %v822_v29 }
 0x571   :  { %2986 = vmatpush3.bf16.msra.mxu0 %v980_v32  ;;  %2987 = vmatprep.mubr.msk.bf16.mxu0 %vm3589_vm1, %v3588_v15 }
 0x572   :  { %v821_v35 = vpack.c.bf16 %v813_v34, %v813_v34  ;;  %2997 = vmatprep.subr.bf16.mxu0 %v3588_v15 }
 0x574   :  { %2970 = vmatmul.mubr.msk.bf16.vlgmr.msra.gmra.mrb[20].mxu1 %vm327_vm6, %v821_v35 }
 0x575   :  { %2980 = vmatpush3.bf16.msra.mxu1 %v932_v37  ;;  %2981 = vmatprep.mubr.msk.bf16.mxu1 %vm3589_vm1, %v3588_v15  ;;  %v3262_v37 = vld [vmem:[#allocation7] sm:$0xff]  }
 0x576   :  { %2991 = vmatprep.subr.bf16.mxu1 %v3588_v15 }
 0x57f   :  { %1166 = vrot.lane.b32.xlu0 %v3889_v14, %s3577_s1 }
 0x5b9   :  { %v789_v40 = vpop.xlane.xlu1 %788 }
 0x5ba   :  { %3304 = vrcp.f32 %v789_v40  ;;  %v3263_v40 = vld [vmem:[#allocation7 + $0x8] sm:$0xff]  }
 0x5bd   :  { %v792_v43 = vpop.xlane.xlu0 %791 }
 0x5be   :  { %3306 = vrcp.f32 %v792_v43 }
 0x5c1   :  { %v795_v44 = vpop.xlane.xlu1 %794  ;;  %v1071_v50 = vpop.permute.xlu0 %1070 }
 0x5c2   :  { %3308 = vrcp.f32 %v795_v44  ;;  %v1076_v57 = vsel %vm834_vm7, %v1071_v50, 0 }
 0x5c4   :  { %v3305_v33 = vpop.eup %3304 }
 0x5c5   :  { %v815_v42 = vmul.f32 %v3305_v33, %v3981_v59 }
 0x5c7   :  { %v823_v45 = vpack.c.bf16 %v815_v42, %v815_v42 }
 0x5c8   :  { %v3307_v46 = vpop.eup %3306 }
 0x5c9   :  { %v816_v49 = vmul.f32 %v3307_v46, %v3985_v61  ;;  %2982 = vmatmul.mubr.msk.bf16.vlgmr.msra.gmra.mrb[24].mxu1 %vm327_vm6, %v823_v45  ;;  %v801_v14 = vpop.xlane.xlu1 %800 }
 0x5ca   :  { %2992 = vmatpush3.bf16.msra.mxu1 %v1028_v47  ;;  %2993 = vmatprep.mubr.msk.bf16.mxu1 %vm3589_vm1, %v3588_v15  ;;  %3310 = vrcp.f32 %v801_v14 }
 0x5cb   :  { %v824_v51 = vpack.c.bf16 %v816_v49, %v816_v49  ;;  %3003 = vmatprep.subr.bf16.mxu1 %v3588_v15 }
 0x5cc   :  { %v3309_v3 = vpop.eup %3308 }
 0x5cd   :  { %2988 = vmatmul.mubr.msk.bf16.vlgmr.msra.gmra.mrb[20].mxu0 %vm327_vm6, %v824_v51  ;;  %v817_v4 = vmul.f32 %v3309_v3, %v3991_v10  ;;  %v1119_v41 = vpop.permute.xlu1 %1118 }
 0x5ce   :  { %2998 = vmatpush3.bf16.msra.mxu0 %v1076_v57  ;;  %2999 = vmatprep.mubr.msk.bf16.mxu0 %vm3589_vm1, %v3588_v15  ;;  %v1124_v52 = vsel %vm834_vm7, %v1119_v41, 0 }
 0x5cf   :  { %3009 = vmatprep.subr.bf16.mxu0 %v3588_v15  ;;  %v825_v48 = vpack.c.bf16 %v817_v4, %v817_v4 }
 0x5d1   :  { %2994 = vmatmul.mubr.msk.bf16.vlgmr.msra.gmra.mrb[28].mxu1 %vm327_vm6, %v825_v48 }
 0x5d2   :  { %3004 = vmatpush3.bf16.msra.mxu1 %v1124_v52  ;;  %3005 = vmatprep.mubr.msk.bf16.mxu1 %vm3589_vm1, %v3588_v15 }
 0x5d3   :  { %3015 = vmatprep.subr.bf16.mxu1 %v3588_v15 }
 0x5d4   :  { %v3311_v53 = vpop.eup %3310 }
 0x5d5   :  { %v819_v54 = vmul.f32 %v3311_v53, %v3995_v12 }
 0x5d7   :  { %v827_v55 = vpack.c.bf16 %v819_v54, %v819_v54 }
 0x5d9   :  { %3006 = vmatmul.mubr.msk.bf16.vlgmr.msra.gmra.mrb[32].mxu1 %vm327_vm6, %v827_v55 }
 0x5da   :  { %3019 = vmatprep.mubr.msk.bf16.mxu1 %vm3589_vm1, %v3588_v15  ;;  %3016 = vmatpush3.bf16.msra.mxu1 %v3262_v37 }
 0x5db   :  { %3017 = vmatprep.subr.bf16.mxu1 %v3588_v15 }
 0x5de   :  { %3018 = vmatpush3.bf16.msra.mxu1 %v3263_v40 }
 0x5df   :  { %3031 = vmatprep.subr.bf16.mxu1 %v3588_v15 }
 0x5f2   :  { %v798_v56 = vpop.xlane.xlu0 %797 }
 0x5f3   :  { %3312 = vrcp.f32 %v798_v56 }
 0x5f6   :  { %v804_v58 = vpop.xlane.xlu0 %803 }
 0x5f7   :  { %3314 = vrcp.f32 %v804_v58 }
 0x5fa   :  { %v1167_v63 = vpop.permute.xlu0 %1166 }
 0x5fb   :  { %v1172_v61 = vsel %vm834_vm7, %v1167_v63, 0 }
 0x5fd   :  { %v3313_v59 = vpop.eup %3312 }
 0x5fe   :  { %v818_v60 = vmul.f32 %v3313_v59, %v4005_v25 }
 0x600   :  { %v826_v9 = vpack.c.bf16 %v818_v60, %v818_v60 }
 0x601   :  { %v3315_v2 = vpop.eup %3314 }
 0x602   :  { %3000 = vmatmul.mubr.msk.bf16.vlgmr.msra.gmra.mrb[24].mxu0 %vm327_vm6, %v826_v9  ;;  %v820_v5 = vmul.f32 %v3315_v2, %v4009_v27  ;;  %v4072_v9 = vld [vmem:[#allocation13] ss:$0 sm:$0xff] }
 0x603   :  { %3010 = vmatpush3.bf16.msra.mxu0 %v1172_v61  ;;  %3011 = vmatprep.mubr.msk.bf16.mxu0 %vm3589_vm1, %v3588_v15 }
 0x604   :  { %3023 = vmatprep.subr.bf16.mxu0 %v3588_v15  ;;  %v828_v62 = vpack.c.bf16 %v820_v5, %v820_v5 }
 0x60a   :  { %3012 = vmatmul.mubr.msk.bf16.vlgmr.msra.gmra.mrb[28].mxu0 %vm327_vm6, %v828_v62 }
 0x60b   :  { %3027 = vmatprep.mubr.msk.bf16.mxu0 %vm3589_vm1, %v3588_v15 }
 0x643   :  { %v920_v6 = vpop.f32.mrb[16].mxu0 }
 0x644   :  { %v2977_v7 = vpop.f32.mrb[17].mxu0 }
 0x645   :  { %v923_v10 = vpop.f32.mrb[18].mxu0 }
 0x646   :  { %v2978_v11 = vpop.f32.mrb[19].mxu0 }
 0x647   :  { %v872_v12 = vpop.f32.mrb[20].mxu1 }
 0x648   :  { %v2971_v13 = vpop.f32.mrb[21].mxu1 }
 0x649   :  { %v875_v17 = vpop.f32.mrb[22].mxu1 }
 0x64a   :  { %v2972_v18 = vpop.f32.mrb[23].mxu1 }
 0x69c   :  { %v968_v19 = vpop.f32.mrb[24].mxu1 }
 0x69d   :  { %v2983_v21 = vpop.f32.mrb[25].mxu1 }
 0x69e   :  { %v971_v22 = vpop.f32.mrb[26].mxu1 }
 0x69f   :  { %v2984_v23 = vpop.f32.mrb[27].mxu1 }
 0x6a0   :  { %v1016_v24 = vpop.f32.mrb[20].mxu0 }
 0x6a1   :  { %v3200_v25 = vpack.i.bf16 %v1016_v24, %v968_v19  ;;  %v2989_v26 = vpop.f32.mrb[21].mxu0 }
 0x6a2   :  { %v1019_v8 = vpop.f32.mrb[22].mxu0  ;;  %v3264_v26 = vld [vmem:[#allocation10] sm:$0xff]  }
 0x6a3   :  { %v2990_v27 = vpop.f32.mrb[23].mxu0  ;;  %3201 = vrot.lane.b32.xlu1 %v3200_v25, %s3594_s2  ;;  %v3265_v8 = vld [vmem:[#allocation10 + $0x8] sm:$0xff]  }
 0x6a4   :  { %v1064_v16 = vpop.f32.mrb[28].mxu1  ;;  %v165_v27 = vld [vmem:[%s4399_s23] sm:$0xff] }
 0x6a5   :  { %v2995_v20 = vpop.f32.mrb[29].mxu1 }
 0x6a6   :  { %v1067_v28 = vpop.f32.mrb[30].mxu1  ;;  %v3266_v20 = vld [vmem:[#allocation8] sm:$0xff]  }
 0x6a7   :  { %v2996_v29 = vpop.f32.mrb[31].mxu1  ;;  %3024 = vmatpush3.bf16.msra.mxu0 %v3266_v20  ;;  %v3267_v28 = vld [vmem:[#allocation8 + $0x8] sm:$0xff]  }
 0x6a8   :  { %3025 = vmatprep.subr.bf16.mxu0 %v3588_v15 }
 0x6ab   :  { %3026 = vmatpush3.bf16.msra.mxu0 %v3267_v28 }
 0x6ac   :  { %v1160_v31 = vpop.f32.mrb[32].mxu1  ;;  %3039 = vmatprep.subr.bf16.mxu0 %v3588_v15 }
 0x6ad   :  { %v3007_v32 = vpop.f32.mrb[33].mxu1 }
 0x6ae   :  { %v1163_v34 = vpop.f32.mrb[34].mxu1 }
 0x6af   :  { %v3008_v35 = vpop.f32.mrb[35].mxu1 }
 0x6d5   :  { %v1112_v38 = vpop.f32.mrb[24].mxu0 }
 0x6d6   :  { %v3205_v43 = vpack.i.bf16 %v1112_v38, %v1064_v16  ;;  %v3001_v44 = vpop.f32.mrb[25].mxu0  ;;  %v166_v16 = vld [vmem:[%s4399_s23 + $0x8] sm:$0xff] }
 0x6d7   :  { %v1115_v33 = vpop.f32.mrb[26].mxu0  ;;  %v1438_v29 = vpack.c.bf16 %v166_v16, %v165_v27 }
 0x6d8   :  { %v3002_v42 = vpop.f32.mrb[27].mxu0  ;;  %3206 = vrot.lane.b32.xlu0 %v3205_v43, %s3582_s9 }
 0x6dd   :  { %v1208_v45 = vpop.f32.mrb[28].mxu0 }
 0x6de   :  { %v3210_v46 = vpack.i.bf16 %v1208_v45, %v1160_v31  ;;  %v3013_v47 = vpop.f32.mrb[29].mxu0  ;;  %v4103_v31 = vld [vmem:[#allocation11] ss:$0 sm:$0xff] }
 0x6df   :  { %v1211_v49 = vpop.f32.mrb[30].mxu0 }
 0x6e0   :  { %v3014_v50 = vpop.f32.mrb[31].mxu0  ;;  %3211 = vrot.lane.b32.xlu1 %v3210_v46, %s3595_s3 }
 0x715   :  { %v3202_v14 = vpop.permute.xlu1 %3201 }
 0x716   :  { %v3204_v3 = vunpack.i.h.bf16 %v3202_v14  ;;  %v3203_v57 = vunpack.i.l.bf16 %v3202_v14 }
 0x718   :  { %v1239_v52 = vsel %vm327_vm6, %v920_v6, %v3204_v3  ;;  %v1238_v53 = vsel %vm327_vm6, %v872_v12, %v3203_v57 }
 0x74a   :  { %v3207_v51 = vpop.permute.xlu0 %3206 }
 0x74b   :  { %v3209_v4 = vunpack.i.h.bf16 %v3207_v51  ;;  %v3208_v41 = vunpack.i.l.bf16 %v3207_v51  ;;  %v1355_v51 = vsub.s32 1, %v3841_v30 }
 0x74d   :  { %v1242_v56 = vsel %vm1240_vm8, %v1239_v52, %v3209_v4  ;;  %v1241_v58 = vsel %vm1240_vm8, %v1238_v53, %v3208_v41  ;;  %v1356_v3 = vrot.slane %v3847_v36, %v1355_v51  ;;  %v1364_v41 = vrot.slane %v3853_v39, %v1355_v51 }
 0x752   :  { %v3212_v48 = vpop.permute.xlu1 %3211 }
 0x753   :  { %v3214_v54 = vunpack.i.h.bf16 %v3212_v48  ;;  %v3213_v55 = vunpack.i.l.bf16 %v3212_v48 }
 0x755   :  { %v1245_v59 = vsel %vm1243_vm9, %v1242_v56, %v3214_v54  ;;  %v1244_v60 = vsel %vm1243_vm9, %v1241_v58, %v3213_v55 }
 0x756   :  { %v1250_v63 = vpack.c.bf16 %v1245_v59, %v1244_v60 }
 0x758   :  { %3020 = vmatmul.mubr.msk.bf16.vlgmr.msra.gmra.mrb[36].mxu1 %vm172_vm0, %v1250_v63 }
 0x759   :  { %3035 = vmatprep.mubr.msk.bf16.mxu1 %vm3589_vm1, %v3588_v15  ;;  %3032 = vmatpush3.bf16.msra.mxu1 %v3264_v26 }
 0x75a   :  { %3033 = vmatprep.subr.bf16.mxu1 %v3588_v15 }
 0x75d   :  { %3034 = vmatpush3.bf16.msra.mxu1 %v3265_v8 }
 0x75e   :  { %3045 = vmatprep.subr.bf16.mxu1 %v3588_v15 }
 0x760   :  { %3036 = vmatmul.mubr.msk.bf16.vlgmr.msra.gmra.mrb[40].mxu1 %vm172_vm0, %v1438_v29 }
 0x761   :  { %3047 = vmatprep.mubr.msk.bf16.mxu1 %vm3589_vm1, %v3588_v15 }
 0x82b   :  { %v1306_v2 = vpop.f32.mrb[36].mxu1 }
 0x82c   :  { %v1307_v61 = vadd.f32 %v4072_v9, %v1306_v2  ;;  %v3021_v5 = vpop.f32.mrb[37].mxu1 }
 0x82d   :  { %v1309_v62 = vpop.f32.mrb[38].mxu1 }
 0x82e   :  { %v4076_v6 = vadd.f32 %v1307_v61, %v3818_v0  ;;  %v1310_v7 = vadd.f32 %v4072_v9, %v1309_v62  ;;  %v3022_v10 = vpop.f32.mrb[39].mxu1 }
 0x830   :  { %v4080_v11 = vadd.f32 %v1310_v7, %v3823_v1  ;;  %v1315_v12 = vsel %vm172_vm0, %v4076_v6, 0.0 }
 0x831   :  { %1316 = vadd.xlane.f32.xlu0 %v1315_v12 }
 0x832   :  { %v1318_v13 = vsel %vm172_vm0, %v4080_v11, 0.0 }
 0x833   :  { %1319 = vadd.xlane.f32.xlu1 %v1318_v13  ;;  %v1491_v60 = vpop.f32.mrb[40].mxu1 }
 0x834   :  { %v3037_v63 = vpop.f32.mrb[41].mxu1 }
 0x835   :  { %v1494_v2 = vpop.f32.mrb[42].mxu1 }
 0x836   :  { %v3038_v5 = vpop.f32.mrb[43].mxu1 }
 0x8be   :  { %v1317_v17 = vpop.xlane.xlu0 %1316 }
 0x8bf   :  { %v1321_v18 = vmul.f32 0.03125, %v1317_v17 }
 0x8c0   :  { %v1320_v19 = vpop.xlane.xlu1 %1319 }
 0x8c1   :  { %v1323_v0 = vsub.f32 %v4076_v6, %v1321_v18  ;;  %v1322_v21 = vmul.f32 0.03125, %v1320_v19 }
 0x8c3   :  { %v1324_v22 = vsub.f32 %v4080_v11, %v1322_v21  ;;  %v1325_v23 = vmul.f32 %v1323_v0, %v1323_v0  ;;  %v1357_v4 = vmul.f32 %v1356_v3, %v1323_v0 }
 0x8c5   :  { %v1327_v1 = vsel %vm172_vm0, %v1325_v23, 0.0  ;;  %v1326_v24 = vmul.f32 %v1324_v22, %v1324_v22  ;;  %v1358_v48 = vmul.f32 %v1356_v3, %v1324_v22 }
 0x8c6   :  { %1328 = vadd.xlane.f32.xlu0 %v1327_v1 }
 0x8c7   :  { %v1330_v25 = vsel %vm172_vm0, %v1326_v24, 0.0 }
 0x8ca   :  { %1331 = vadd.xlane.f32.xlu0 %v1330_v25 }
 0x8e0   :  { %1451 = vrot.lane.b32.xlu0 %v4103_v31, %s3593_s6 }
 0x953   :  { %v1329_v32 = vpop.xlane.xlu0 %1328 }
 0x954   :  { %v1333_v34 = vmul.f32 0.032258064, %v1329_v32 }
 0x956   :  { %3316 = vrsqrt.f32 %v1333_v34  ;;  %vm1337_vm10 = vcmp.eq.f32.partialorder %v1333_v34, inf  ;;  %v1340_v43 = vand.u32 2147483648, %v1333_v34  ;;  %vm1339_vm11 = vcmp.eq.f32.partialorder %v1333_v34, 0.0 }
 0x957   :  { %v1332_v35 = vpop.xlane.xlu0 %1331 }
 0x958   :  { %v1334_v37 = vmul.f32 0.032258064, %v1332_v35 }
 0x95a   :  { %3318 = vrsqrt.f32 %v1334_v37  ;;  %vm1344_vm12 = vcmp.eq.f32.partialorder %v1334_v37, inf  ;;  %v1347_v47 = vand.u32 2147483648, %v1334_v37  ;;  %vm1346_vm13 = vcmp.eq.f32.partialorder %v1334_v37, 0.0 }
 0x95b   :  { %v1452_v59 = vpop.permute.xlu0 %1451 }
 0x95c   :  { %v1492_v36 = vadd.f32 %v1491_v60, %v1452_v59  ;;  %v1495_v61 = vadd.f32 %v1494_v2, %v1452_v59  ;;  %v2802_v60 = vld [vmem:[#allocation2] ss:$0 sm:$0xff] }
 0x95e   :  { %v1548_v39 = vpack.c.bf16 %v1492_v36, %v1492_v36  ;;  %v3215_v62 = vpack.i.bf16 %v1495_v61, %v1492_v36  ;;  %v4114_v10 = vpack.c.bf16 %v1495_v61, %v1495_v61 }
 0x960   :  { %v3317_v38 = vpop.eup %3316  ;;  %v1560_v7 = vsel %vm327_vm6, %v1548_v39, 0  ;;  %3216 = vrot.lane.b32.xlu1 %v3215_v62, %s3591_s21  ;;  %v1606_v12 = vsel %vm327_vm6, %v4114_v10, 0 }
 0x961   :  { %v1336_v40 = vmul.f32 %v3317_v38, %v1333_v34  ;;  %3046 = vmatpush3.bf16.xpose.msra.mxu1 %v1606_v12 }
 0x962   :  { %3057 = vmatprep.subr.bf16.mxu1 %v3588_v15 }
 0x963   :  { %v1338_v44 = vsel %vm1337_vm10, %v1333_v34, %v1336_v40 }
 0x964   :  { %v3319_v33 = vpop.eup %3318  ;;  %v1341_v42 = vsel %vm1339_vm11, %v1340_v43, %v1338_v44 }
 0x965   :  { %v1349_v45 = vadd.f32 1e-06, %v1341_v42  ;;  %v1343_v46 = vmul.f32 %v3319_v33, %v1334_v37 }
 0x967   :  { %3320 = vrcp.f32 %v1349_v45  ;;  %v1345_v49 = vsel %vm1344_vm12, %v1334_v37, %v1343_v46 }
 0x968   :  { %v1348_v50 = vsel %vm1346_vm13, %v1347_v47, %v1345_v49 }
 0x969   :  { %v1350_v14 = vadd.f32 1e-06, %v1348_v50 }
 0x96b   :  { %3322 = vrcp.f32 %v1350_v14 }
 0x971   :  { %v3321_v57 = vpop.eup %3320 }
 0x972   :  { %v1359_v52 = vmul.f32 %v3321_v57, %v1357_v4 }
 0x974   :  { %v1365_v55 = vadd.f32 %v1364_v41, %v1359_v52 }
 0x975   :  { %v3323_v53 = vpop.eup %3322 }
 0x976   :  { %v1360_v54 = vmul.f32 %v3323_v53, %v1358_v48 }
 0x978   :  { %v1366_v56 = vadd.f32 %v1364_v41, %v1360_v54 }
 0x97a   :  { %v1371_v58 = vpack.c.bf16 %v1366_v56, %v1365_v55 }
 0x97c   :  { %3028 = vmatmul.mubr.msk.bf16.vlgmr.msra.gmra.mrb[32].mxu0 %vm172_vm0, %v1371_v58 }
 0x97d   :  { %3041 = vmatprep.mubr.msk.bf16.mxu0 %vm3589_vm1, %v3588_v15  ;;  %3040 = vmatpush3.bf16.xpose.msra.mxu0 %v1560_v7 }
 0x97e   :  { %3051 = vmatprep.subr.bf16.mxu0 %v3588_v15 }
 0x9d2   :  { %v3217_v13 = vpop.permute.xlu1 %3216 }
 0x9d3   :  { %v3218_v17 = vunpack.i.l.bf16 %v3217_v13  ;;  %v3219_v18 = vunpack.i.h.bf16 %v3217_v13 }
 0x9d5   :  { %v4121_v19 = vpack.c.bf16 %v3218_v17, %v3218_v17  ;;  %v4124_v1 = vpack.c.bf16 %v3219_v18, %v3219_v18 }
 0x9d7   :  { %v1652_v8 = vsel %vm327_vm6, %v4121_v19, 0  ;;  %v1698_v20 = vsel %vm327_vm6, %v4124_v1, 0 }
 0xa4f   :  { %v1427_v0 = vpop.f32.mrb[32].mxu0 }
 0xa50   :  { %v1428_v21 = vadd.f32 %v4103_v31, %v1427_v0  ;;  %v3029_v22 = vpop.f32.mrb[33].mxu0 }
 0xa51   :  { %v1430_v23 = vpop.f32.mrb[34].mxu0 }
 0xa52   :  { %v1520_v24 = vpack.c.bf16 %v1428_v21, %v1428_v21  ;;  %v1431_v25 = vadd.f32 %v4103_v31, %v1430_v23  ;;  %v3030_v26 = vpop.f32.mrb[35].mxu0 }
 0xa54   :  { %v1521_v27 = vpack.c.bf16 %v1431_v25, %v1431_v25  ;;  %3042 = vmatmul.mubr.msk.bf16.vlgmr.msra.gmra.mrb[36].mxu0 %vm327_vm6, %v1520_v24  ;;  %v3230_v16 = vpack.i.bf16 %v1431_v25, %v1428_v21 }
 0xa55   :  { %3052 = vmatpush3.bf16.xpose.msra.mxu0 %v1652_v8  ;;  %3053 = vmatprep.mubr.msk.bf16.mxu0 %vm3589_vm1, %v3588_v15 }
 0xa56   :  { %3231 = vrot.lane.b32.xlu0 %v3230_v16, %s3590_s25  ;;  %3221 = vrot.lane.b32.xlu1 %v3230_v16, %s3591_s21 }
 0xa57   :  { %3048 = vmatmul.mubr.msk.bf16.vlgmr.msra.gmra.mrb[44].mxu1 %vm327_vm6, %v1521_v27  ;;  %3063 = vmatprep.subr.bf16.mxu0 %v3588_v15 }
 0xa58   :  { %3058 = vmatpush3.bf16.xpose.msra.mxu1 %v1698_v20  ;;  %3059 = vmatprep.mubr.msk.bf16.mxu1 %vm3589_vm1, %v3588_v15 }
 0xa59   :  { %3069 = vmatprep.subr.bf16.mxu1 %v3588_v15 }
 0xa5a   :  { %3241 = vrot.lane.b32.xlu0 %v3230_v16, %s3592_s22  ;;  %3226 = vrot.lane.b32.xlu1 %v3215_v62, %s3590_s25 }
 0xa5e   :  { %3236 = vrot.lane.b32.xlu1 %v3215_v62, %s3592_s22  ;;  %v2803_v62 = vld [vmem:[#allocation2 + $0x1] ss:$0 sm:$0xff] }
 0xa62   :  { %2049 = vrot.lane.b32.xlu1 %v1548_v39, %s3593_s6 }
 0xac8   :  { %v3222_v28 = vpop.permute.xlu1 %3221  ;;  %v3232_v44 = vpop.permute.xlu0 %3231 }
 0xac9   :  { %v3224_v29 = vunpack.i.h.bf16 %v3222_v28  ;;  %v3223_v31 = vunpack.i.l.bf16 %v3222_v28  ;;  %v3234_v49 = vunpack.i.h.bf16 %v3232_v44  ;;  %v3233_v50 = vunpack.i.l.bf16 %v3232_v44 }
 0xacb   :  { %v1523_v32 = vpack.c.bf16 %v3224_v29, %v3224_v29  ;;  %v1522_v34 = vpack.c.bf16 %v3223_v31, %v3223_v31  ;;  %v1525_v3 = vpack.c.bf16 %v3234_v49, %v3234_v49  ;;  %v1524_v57 = vpack.c.bf16 %v3233_v50, %v3233_v50 }
 0xacc   :  { %v3227_v35 = vpop.permute.xlu1 %3226  ;;  %v3242_v4 = vpop.permute.xlu0 %3241 }
 0xacd   :  { %v3229_v37 = vunpack.i.h.bf16 %v3227_v35  ;;  %v3228_v38 = vunpack.i.l.bf16 %v3227_v35  ;;  %3054 = vmatmul.mubr.msk.bf16.vlgmr.msra.gmra.mrb[40].mxu0 %vm327_vm6, %v1522_v34  ;;  %3060 = vmatmul.mubr.msk.bf16.vlgmr.msra.gmra.mrb[48].mxu1 %vm327_vm6, %v1523_v32  ;;  %v3244_v52 = vunpack.i.h.bf16 %v3242_v4  ;;  %v3243_v53 = vunpack.i.l.bf16 %v3242_v4 }
 0xace   :  { %3065 = vmatprep.mubr.msk.bf16.mxu0 %vm3589_vm1, %v3588_v15  ;;  %3071 = vmatprep.mubr.msk.bf16.mxu1 %vm3589_vm1, %v3588_v15 }
 0xacf   :  { %v4151_v40 = vpack.c.bf16 %v3229_v37, %v3229_v37  ;;  %v4153_v43 = vpack.c.bf16 %v3228_v38, %v3228_v38  ;;  %v1527_v55 = vpack.c.bf16 %v3244_v52, %v3244_v52  ;;  %v1526_v56 = vpack.c.bf16 %v3243_v53, %v3243_v53 }
 0xad0   :  { %v3237_v33 = vpop.permute.xlu1 %3236 }
 0xad1   :  { %v3239_v42 = vunpack.i.h.bf16 %v3237_v33  ;;  %v3238_v45 = vunpack.i.l.bf16 %v3237_v33  ;;  %v1744_v46 = vsel %vm327_vm6, %v4153_v43, 0  ;;  %v1790_v47 = vsel %vm327_vm6, %v4151_v40, 0 }
 0xad2   :  { %3064 = vmatpush3.bf16.xpose.msra.mxu0 %v1744_v46  ;;  %3070 = vmatpush3.bf16.xpose.msra.mxu1 %v1790_v47 }
 0xad3   :  { %3075 = vmatprep.subr.bf16.mxu0 %v3588_v15  ;;  %3081 = vmatprep.subr.bf16.mxu1 %v3588_v15  ;;  %v4161_v14 = vpack.c.bf16 %v3239_v42, %v3239_v42  ;;  %v4163_v51 = vpack.c.bf16 %v3238_v45, %v3238_v45 }
 0xad4   :  { %v2050_v54 = vpop.permute.xlu1 %2049 }
 0xad5   :  { %v1836_v41 = vsel %vm327_vm6, %v4163_v51, 0  ;;  %v1882_v48 = vsel %vm327_vm6, %v4161_v14, 0  ;;  %v2055_v58 = vsel %vm834_vm7, %v2050_v54, 0 }
 0xad9   :  { %3066 = vmatmul.mubr.msk.bf16.vlgmr.msra.gmra.mrb[44].mxu0 %vm327_vm6, %v1524_v57  ;;  %3072 = vmatmul.mubr.msk.bf16.vlgmr.msra.gmra.mrb[52].mxu1 %vm327_vm6, %v1525_v3 }
 0xada   :  { %3076 = vmatpush3.bf16.xpose.msra.mxu0 %v1836_v41  ;;  %3082 = vmatpush3.bf16.xpose.msra.mxu1 %v1882_v48 }
 0xadb   :  { %3077 = vmatprep.mubr.msk.bf16.mxu0 %vm3589_vm1, %v3588_v15  ;;  %3083 = vmatprep.mubr.msk.bf16.mxu1 %vm3589_vm1, %v3588_v15 }
 0xadc   :  { %3087 = vmatprep.subr.bf16.mxu0 %v3588_v15  ;;  %3093 = vmatprep.subr.bf16.mxu1 %v3588_v15 }
 0xae1   :  { %3078 = vmatmul.mubr.msk.bf16.vlgmr.msra.gmra.mrb[48].mxu0 %vm327_vm6, %v1526_v56  ;;  %3084 = vmatmul.mubr.msk.bf16.vlgmr.msra.gmra.mrb[56].mxu1 %vm327_vm6, %v1527_v55 }
 0xae2   :  { %3088 = vmatpush3.bf16.msra.mxu0 %v2055_v58  ;;  %3095 = vmatprep.mubr.msk.bf16.mxu1 %vm3589_vm1, %v3588_v15 }
 0xae3   :  { %3089 = vmatprep.mubr.msk.bf16.mxu0 %vm3589_vm1, %v3588_v15  ;;  %3099 = vmatprep.subr.bf16.mxu0 %v3588_v15 }
 0xb27   :  { %v1596_v59 = vpop.f32.mrb[36].mxu0 }
 0xb28   :  { %v1924_v63 = vmul.f32 0.35355338, %v1596_v59  ;;  %v3043_v36 = vpop.f32.mrb[37].mxu0 }
 0xb29   :  { %v1599_v2 = vpop.f32.mrb[38].mxu0 }
 0xb2a   :  { %v1642_v61 = vpop.f32.mrb[44].mxu1  ;;  %v3044_v5 = vpop.f32.mrb[39].mxu0  ;;  %v4185_v39 = vadd.f32 %v2802_v60, %v1924_v63 }
 0xb2b   :  { %v1925_v7 = vmul.f32 0.35355338, %v1642_v61  ;;  %v3049_v12 = vpop.f32.mrb[45].mxu1 }
 0xb2c   :  { %v1645_v13 = vpop.f32.mrb[46].mxu1  ;;  %v1952_v17 = vsel %vm327_vm6, %v4185_v39, -inf }
 0xb2d   :  { %v3050_v18 = vpop.f32.mrb[47].mxu1  ;;  %1953 = vmax.xlane.f32.xlu1 %v1952_v17  ;;  %v1945_v0 = vadd.f32 %v2803_v62, %v1925_v7 }
 0xb2f   :  { %v1955_v21 = vsel %vm327_vm6, %v1945_v0, -inf }
 0xb30   :  { %1956 = vmax.xlane.f32.xlu0 %v1955_v21 }
 0xba0   :  { %v1688_v22 = vpop.f32.mrb[40].mxu0  ;;  %v1734_v23 = vpop.f32.mrb[48].mxu1 }
 0xba1   :  { %v1926_v24 = vmul.f32 0.35355338, %v1688_v22  ;;  %v1927_v25 = vmul.f32 0.35355338, %v1734_v23  ;;  %v3055_v26 = vpop.f32.mrb[41].mxu0  ;;  %v3061_v8 = vpop.f32.mrb[49].mxu1 }
 0xba2   :  { %v1691_v27 = vpop.f32.mrb[42].mxu0  ;;  %v1737_v16 = vpop.f32.mrb[50].mxu1 }
 0xba3   :  { %v3056_v20 = vpop.f32.mrb[43].mxu0  ;;  %v3062_v28 = vpop.f32.mrb[51].mxu1  ;;  %v1946_v29 = vadd.f32 %v2802_v60, %v1926_v24  ;;  %v1947_v32 = vadd.f32 %v2803_v62, %v1927_v25 }
 0xba5   :  { %v1958_v31 = vsel %vm327_vm6, %v1946_v29, -inf  ;;  %v1961_v34 = vsel %vm327_vm6, %v1947_v32, -inf }
 0xba6   :  { %1959 = vmax.xlane.f32.xlu0 %v1958_v31 }
 0xbaa   :  { %1962 = vmax.xlane.f32.xlu0 %v1961_v34 }
 0xbac   :  { %v1780_v35 = vpop.f32.mrb[44].mxu0  ;;  %v1826_v37 = vpop.f32.mrb[52].mxu1 }
 0xbad   :  { %v1928_v38 = vmul.f32 0.35355338, %v1780_v35  ;;  %v1929_v44 = vmul.f32 0.35355338, %v1826_v37  ;;  %v3067_v33 = vpop.f32.mrb[45].mxu0  ;;  %v3073_v42 = vpop.f32.mrb[53].mxu1 }
 0xbae   :  { %v1783_v45 = vpop.f32.mrb[46].mxu0  ;;  %v1829_v46 = vpop.f32.mrb[54].mxu1 }
 0xbaf   :  { %v3068_v47 = vpop.f32.mrb[47].mxu0  ;;  %v3074_v49 = vpop.f32.mrb[55].mxu1  ;;  %v1948_v50 = vadd.f32 %v2802_v60, %v1928_v38  ;;  %v4192_v3 = vadd.f32 %v2803_v62, %v1929_v44 }
 0xbb1   :  { %v1964_v57 = vsel %vm327_vm6, %v1948_v50, -inf  ;;  %v1967_v4 = vsel %vm327_vm6, %v4192_v3, -inf }
 0xbb2   :  { %1965 = vmax.xlane.f32.xlu1 %v1964_v57  ;;  %1968 = vmax.xlane.f32.xlu0 %v1967_v4 }
 0xbb4   :  { %v1872_v41 = vpop.f32.mrb[48].mxu0  ;;  %v1918_v48 = vpop.f32.mrb[56].mxu1 }
 0xbb5   :  { %v1930_v52 = vmul.f32 0.35355338, %v1872_v41  ;;  %v1931_v53 = vmul.f32 0.35355338, %v1918_v48  ;;  %v3079_v54 = vpop.f32.mrb[49].mxu0  ;;  %v3085_v55 = vpop.f32.mrb[57].mxu1 }
 0xbb6   :  { %v1875_v56 = vpop.f32.mrb[50].mxu0  ;;  %v1921_v58 = vpop.f32.mrb[58].mxu1 }
 0xbb7   :  { %v3080_v59 = vpop.f32.mrb[51].mxu0  ;;  %v3086_v63 = vpop.f32.mrb[59].mxu1  ;;  %v1950_v36 = vadd.f32 %v2802_v60, %v1930_v52  ;;  %v4197_v2 = vadd.f32 %v2803_v62, %v1931_v53 }
 0xbb9   :  { %v1970_v61 = vsel %vm327_vm6, %v1950_v36, -inf  ;;  %v1973_v5 = vsel %vm327_vm6, %v4197_v2, -inf }
 0xbba   :  { %1971 = vmax.xlane.f32.xlu1 %v1970_v61  ;;  %1974 = vmax.xlane.f32.xlu0 %v1973_v5  ;;  %v1954_v62 = vpop.xlane.xlu1 %1953 }
 0xbbb   :  { %v1976_v12 = vsub.f32 %v4185_v39, %v1954_v62 }
 0xbbd   :  { %v1957_v7 = vpop.xlane.xlu0 %1956  ;;  %v1984_v17 = vmul.f32 1.442695, %v1976_v12 }
 0xbbe   :  { %v1977_v60 = vsub.f32 %v1945_v0, %v1957_v7 }
 0xbc0   :  { %v1986_v13 = vmul.f32 1.442695, %v1977_v60 }
 0xbc2   :  { %3324 = vpow2.f32 %v1986_v13 }
 0xbc3   :  { %3326 = vpow2.f32 %v1984_v17 }
 0xbcb   :  { %2147 = vrot.lane.b32.xlu1 %v4121_v19, %s3593_s6 }
 0xbcc   :  { %v3325_v18 = vpop.eup %3324 }
 0xbcd   :  { %v2003_v21 = vsel %vm327_vm6, %v3325_v18, 0.0  ;;  %v4210_v22 = vpop.eup %3326 }
 0xbce   :  { %v2000_v19 = vsel %vm327_vm6, %v4210_v22, 0.0 }
 0xbcf   :  { %2196 = vrot.lane.b32.xlu1 %v4124_v1, %s3593_s6 }
 0xbd0   :  { %2098 = vrot.lane.b32.xlu0 %v4114_v10, %s3593_s6 }
 0xbef   :  { %2004 = vadd.xlane.f32.xlu0 %v2003_v21 }
 0xbf3   :  { %2001 = vadd.xlane.f32.xlu1 %v2000_v19 }
 0xc04   :  { %2245 = vrot.lane.b32.xlu1 %v4153_v43, %s3593_s6 }
 0xc33   :  { %v1960_v10 = vpop.xlane.xlu0 %1959 }
 0xc34   :  { %v1978_v1 = vsub.f32 %v1946_v29, %v1960_v10 }
 0xc36   :  { %v1988_v39 = vmul.f32 1.442695, %v1978_v1 }
 0xc37   :  { %v1963_v0 = vpop.xlane.xlu0 %1962 }
 0xc38   :  { %3328 = vpow2.f32 %v1988_v39  ;;  %v1979_v23 = vsub.f32 %v1947_v32, %v1963_v0 }
 0xc3a   :  { %v1990_v24 = vmul.f32 1.442695, %v1979_v23 }
 0xc3c   :  { %3330 = vpow2.f32 %v1990_v24 }
 0xc3f   :  { %v1966_v25 = vpop.xlane.xlu1 %1965  ;;  %v1969_v16 = vpop.xlane.xlu0 %1968 }
 0xc40   :  { %v1980_v26 = vsub.f32 %v1948_v50, %v1966_v25  ;;  %v1981_v45 = vsub.f32 %v4192_v3, %v1969_v16 }
 0xc42   :  { %v4216_v8 = vpop.eup %3328  ;;  %v1992_v27 = vmul.f32 1.442695, %v1980_v26  ;;  %v1994_v46 = vmul.f32 1.442695, %v1981_v45 }
 0xc43   :  { %v2006_v20 = vsel %vm327_vm6, %v4216_v8, 0.0 }
 0xc44   :  { %3332 = vpow2.f32 %v1992_v27  ;;  %2007 = vadd.xlane.f32.xlu1 %v2006_v20 }
 0xc46   :  { %v4220_v43 = vpop.eup %3330 }
 0xc47   :  { %v1972_v28 = vpop.xlane.xlu1 %1971  ;;  %v1975_v29 = vpop.xlane.xlu0 %1974  ;;  %v2009_v31 = vsel %vm327_vm6, %v4220_v43, 0.0 }
 0xc48   :  { %v1982_v32 = vsub.f32 %v1950_v36, %v1972_v28  ;;  %2010 = vadd.xlane.f32.xlu0 %v2009_v31  ;;  %v1983_v47 = vsub.f32 %v4197_v2, %v1975_v29 }
 0xc4a   :  { %v1996_v34 = vmul.f32 1.442695, %v1982_v32  ;;  %v1998_v49 = vmul.f32 1.442695, %v1983_v47 }
 0xc4b   :  { %v2099_v35 = vpop.permute.xlu0 %2098  ;;  %v2148_v50 = vpop.permute.xlu1 %2147 }
 0xc4c   :  { %3334 = vpow2.f32 %v1996_v34  ;;  %v2104_v37 = vsel %vm834_vm7, %v2099_v35, 0  ;;  %v2153_v63 = vsel %vm834_vm7, %v2148_v50, 0 }
 0xc4d   :  { %3094 = vmatpush3.bf16.msra.mxu1 %v2104_v37  ;;  %3336 = vpow2.f32 %v1994_v46 }
 0xc4e   :  { %v4225_v38 = vpop.eup %3332  ;;  %3105 = vmatprep.subr.bf16.mxu1 %v3588_v15  ;;  %3338 = vpow2.f32 %v1998_v49 }
 0xc4f   :  { %v2012_v44 = vsel %vm327_vm6, %v4225_v38, 0.0  ;;  %v2197_v4 = vpop.permute.xlu1 %2196 }
 0xc50   :  { %2013 = vadd.xlane.f32.xlu1 %v2012_v44  ;;  %v2202_v56 = vsel %vm834_vm7, %v2197_v4, 0 }
 0xc56   :  { %v4230_v33 = vpop.eup %3334 }
 0xc57   :  { %v2018_v42 = vsel %vm327_vm6, %v4230_v33, 0.0  ;;  %v4240_v57 = vpop.eup %3336 }
 0xc58   :  { %2019 = vadd.xlane.f32.xlu1 %v2018_v42  ;;  %v2015_v48 = vsel %vm327_vm6, %v4240_v57, 0.0 }
 0xc5e   :  { %2294 = vrot.lane.b32.xlu0 %v4151_v40, %s3593_s6  ;;  %v4244_v40 = vpop.eup %3338 }
 0xc69   :  { %2343 = vrot.lane.b32.xlu1 %v4163_v51, %s3593_s6  ;;  %v2021_v51 = vsel %vm327_vm6, %v4244_v40, 0.0 }
 0xc7c   :  { %v2005_v41 = vpop.xlane.xlu0 %2004 }
 0xc7d   :  { %3340 = vrcp.f32 %v2005_v41  ;;  %2016 = vadd.xlane.f32.xlu0 %v2015_v48 }
 0xc80   :  { %v2002_v3 = vpop.xlane.xlu1 %2001 }
 0xc81   :  { %3342 = vrcp.f32 %v2002_v3  ;;  %2022 = vadd.xlane.f32.xlu0 %v2021_v51 }
 0xc84   :  { %v2246_v36 = vpop.permute.xlu1 %2245 }
 0xc85   :  { %v2251_v13 = vsel %vm834_vm7, %v2246_v36, 0  ;;  %v3269_v36 = vld [vmem:[%s4384_s10 + $0x8] sm:$0xff]  }
 0xc87   :  { %v3341_v52 = vpop.eup %3340 }
 0xc88   :  { %v2033_v53 = vmul.f32 %v3341_v52, %v3325_v18 }
 0xc8a   :  { %v2041_v54 = vpack.c.bf16 %v2033_v53, %v2033_v53 }
 0xc8b   :  { %v3343_v55 = vpop.eup %3342 }
 0xc8c   :  { %v2032_v58 = vmul.f32 %v3343_v55, %v4210_v22  ;;  %3096 = vmatmul.mubr.msk.bf16.vlgmr.msra.gmra.mrb[60].mxu1 %vm327_vm6, %v2041_v54 }
 0xc8d   :  { %3106 = vmatpush3.bf16.msra.mxu1 %v2202_v56  ;;  %3107 = vmatprep.mubr.msk.bf16.mxu1 %vm3589_vm1, %v3588_v15 }
 0xc8e   :  { %v2040_v59 = vpack.c.bf16 %v2032_v58, %v2032_v58  ;;  %3117 = vmatprep.subr.bf16.mxu1 %v3588_v15 }
 0xc90   :  { %3090 = vmatmul.mubr.msk.bf16.vlgmr.msra.gmra.mrb[52].mxu0 %vm327_vm6, %v2040_v59  ;;  %v3268_v59 = vld [vmem:[%s4384_s10] sm:$0xff]  }
 0xc91   :  { %3100 = vmatpush3.bf16.msra.mxu0 %v2153_v63  ;;  %3101 = vmatprep.mubr.msk.bf16.mxu0 %vm3589_vm1, %v3588_v15 }
 0xc92   :  { %3111 = vmatprep.subr.bf16.mxu0 %v3588_v15 }
 0xc97   :  { %2392 = vrot.lane.b32.xlu0 %v4161_v14, %s3593_s6 }
 0xcd1   :  { %v2008_v2 = vpop.xlane.xlu1 %2007 }
 0xcd2   :  { %3344 = vrcp.f32 %v2008_v2 }
 0xcd5   :  { %v2011_v61 = vpop.xlane.xlu0 %2010 }
 0xcd6   :  { %3346 = vrcp.f32 %v2011_v61 }
 0xcd9   :  { %v2295_v18 = vpop.permute.xlu0 %2294 }
 0xcda   :  { %v2300_v21 = vsel %vm834_vm7, %v2295_v18, 0 }
 0xcdc   :  { %v3345_v5 = vpop.eup %3344 }
 0xcdd   :  { %v2034_v7 = vmul.f32 %v3345_v5, %v4216_v8  ;;  %v2014_v60 = vpop.xlane.xlu1 %2013 }
 0xcde   :  { %3348 = vrcp.f32 %v2014_v60 }
 0xcdf   :  { %v2042_v62 = vpack.c.bf16 %v2034_v7, %v2034_v7 }
 0xce0   :  { %v3347_v12 = vpop.eup %3346 }
 0xce1   :  { %v2035_v17 = vmul.f32 %v3347_v12, %v4220_v43  ;;  %3102 = vmatmul.mubr.msk.bf16.vlgmr.msra.gmra.mrb[56].mxu0 %vm327_vm6, %v2042_v62 }
 0xce2   :  { %3112 = vmatpush3.bf16.msra.mxu0 %v2251_v13  ;;  %3113 = vmatprep.mubr.msk.bf16.mxu0 %vm3589_vm1, %v3588_v15 }
 0xce3   :  { %v2043_v14 = vpack.c.bf16 %v2035_v17, %v2035_v17  ;;  %3123 = vmatprep.subr.bf16.mxu0 %v3588_v15 }
 0xce5   :  { %v2020_v22 = vpop.xlane.xlu1 %2019  ;;  %3108 = vmatmul.mubr.msk.bf16.vlgmr.msra.gmra.mrb[64].mxu1 %vm327_vm6, %v2043_v14 }
 0xce6   :  { %3350 = vrcp.f32 %v2020_v22  ;;  %3118 = vmatpush3.bf16.msra.mxu1 %v2300_v21  ;;  %3119 = vmatprep.mubr.msk.bf16.mxu1 %vm3589_vm1, %v3588_v15 }
 0xce7   :  { %3129 = vmatprep.subr.bf16.mxu1 %v3588_v15 }
 0xce8   :  { %v3349_v19 = vpop.eup %3348 }
 0xce9   :  { %v2036_v10 = vmul.f32 %v3349_v19, %v4225_v38  ;;  %v2344_v1 = vpop.permute.xlu1 %2343 }
 0xcea   :  { %v2349_v0 = vsel %vm834_vm7, %v2344_v1, 0 }
 0xceb   :  { %v2044_v39 = vpack.c.bf16 %v2036_v10, %v2036_v10 }
 0xced   :  { %3114 = vmatmul.mubr.msk.bf16.vlgmr.msra.gmra.mrb[60].mxu0 %vm327_vm6, %v2044_v39 }
 0xcee   :  { %3124 = vmatpush3.bf16.msra.mxu0 %v2349_v0  ;;  %3125 = vmatprep.mubr.msk.bf16.mxu0 %vm3589_vm1, %v3588_v15 }
 0xcef   :  { %3135 = vmatprep.subr.bf16.mxu0 %v3588_v15 }
 0xcf0   :  { %v3351_v23 = vpop.eup %3350 }
 0xcf1   :  { %v2038_v24 = vmul.f32 %v3351_v23, %v4230_v33 }
 0xcf3   :  { %v2046_v25 = vpack.c.bf16 %v2038_v24, %v2038_v24 }
 0xcf5   :  { %3126 = vmatmul.mubr.msk.bf16.vlgmr.msra.gmra.mrb[64].mxu0 %vm327_vm6, %v2046_v25 }
 0xcf6   :  { %3139 = vmatprep.mubr.msk.bf16.mxu0 %vm3589_vm1, %v3588_v15  ;;  %3136 = vmatpush3.bf16.msra.mxu0 %v3268_v59 }
 0xcf7   :  { %3137 = vmatprep.subr.bf16.mxu0 %v3588_v15 }
 0xcfa   :  { %3138 = vmatpush3.bf16.msra.mxu0 %v3269_v36 }
 0xcfb   :  { %3151 = vmatprep.subr.bf16.mxu0 %v3588_v15 }
 0xd0a   :  { %v2017_v26 = vpop.xlane.xlu0 %2016 }
 0xd0b   :  { %3352 = vrcp.f32 %v2017_v26 }
 0xd0e   :  { %v2023_v8 = vpop.xlane.xlu0 %2022 }
 0xd0f   :  { %3354 = vrcp.f32 %v2023_v8 }
 0xd12   :  { %v2393_v20 = vpop.permute.xlu0 %2392 }
 0xd13   :  { %v2398_v29 = vsel %vm834_vm7, %v2393_v20, 0 }
 0xd15   :  { %v3353_v27 = vpop.eup %3352 }
 0xd16   :  { %v2037_v16 = vmul.f32 %v3353_v27, %v4240_v57 }
 0xd18   :  { %v2045_v43 = vpack.c.bf16 %v2037_v16, %v2037_v16 }
 0xd19   :  { %v3355_v28 = vpop.eup %3354 }
 0xd1a   :  { %3120 = vmatmul.mubr.msk.bf16.vlgmr.msra.gmra.mrb[68].mxu1 %vm327_vm6, %v2045_v43  ;;  %v2039_v31 = vmul.f32 %v3355_v28, %v4244_v40 }
 0xd1b   :  { %3130 = vmatpush3.bf16.msra.mxu1 %v2398_v29  ;;  %3131 = vmatprep.mubr.msk.bf16.mxu1 %vm3589_vm1, %v3588_v15 }
 0xd1c   :  { %3143 = vmatprep.subr.bf16.mxu1 %v3588_v15  ;;  %v2047_v32 = vpack.c.bf16 %v2039_v31, %v2039_v31 }
 0xd22   :  { %3132 = vmatmul.mubr.msk.bf16.vlgmr.msra.gmra.mrb[72].mxu1 %vm327_vm6, %v2047_v32 }
 0xd23   :  { %3147 = vmatprep.mubr.msk.bf16.mxu1 %vm3589_vm1, %v3588_v15 }
 0xd5f   :  { %v2140_v34 = vpop.f32.mrb[60].mxu1 }
 0xd60   :  { %v3097_v35 = vpop.f32.mrb[61].mxu1 }
 0xd61   :  { %v2143_v37 = vpop.f32.mrb[62].mxu1 }
 0xd62   :  { %v3098_v38 = vpop.f32.mrb[63].mxu1 }
 0xd63   :  { %v2091_v44 = vpop.f32.mrb[52].mxu0 }
 0xd64   :  { %v3091_v33 = vpop.f32.mrb[53].mxu0 }
 0xd65   :  { %v2094_v42 = vpop.f32.mrb[54].mxu0 }
 0xd66   :  { %v3092_v45 = vpop.f32.mrb[55].mxu0 }
 0xdb4   :  { %v2189_v46 = vpop.f32.mrb[56].mxu0 }
 0xdb5   :  { %v3103_v47 = vpop.f32.mrb[57].mxu0 }
 0xdb6   :  { %v2192_v49 = vpop.f32.mrb[58].mxu0 }
 0xdb7   :  { %v3104_v50 = vpop.f32.mrb[59].mxu0 }
 0xdb8   :  { %v2238_v57 = vpop.f32.mrb[64].mxu1 }
 0xdb9   :  { %v3245_v4 = vpack.i.bf16 %v2238_v57, %v2189_v46  ;;  %v3109_v41 = vpop.f32.mrb[65].mxu1  ;;  %v3270_v57 = vld [vmem:[#allocation14] sm:$0xff]  }
 0xdba   :  { %v2241_v48 = vpop.f32.mrb[66].mxu1  ;;  %3144 = vmatpush3.bf16.msra.mxu1 %v3270_v57  ;;  %v3272_v41 = vld [vmem:[%s4387_s13] sm:$0xff]  }
 0xdbb   :  { %3246 = vrot.lane.b32.xlu1 %v3245_v4, %s3594_s2  ;;  %v3110_v40 = vpop.f32.mrb[67].mxu1  ;;  %v3271_v4 = vld [vmem:[#allocation14 + $0x8] sm:$0xff]   ;;  %3145 = vmatprep.subr.bf16.mxu1 %v3588_v15  ;;  %v2815_v48 = vld [vmem:[%s4388_s14] ss:$0 sm:$0xff] }
 0xdbc   :  { %v3273_v40 = vld [vmem:[%s4387_s13 + $0x8] sm:$0xff]  }
 0xdbe   :  { %3146 = vmatpush3.bf16.msra.mxu1 %v3271_v4 }
 0xdc0   :  { %v2287_v3 = vpop.f32.mrb[60].mxu0 }
 0xdc1   :  { %v3115_v51 = vpop.f32.mrb[61].mxu0 }
 0xdc2   :  { %v2290_v52 = vpop.f32.mrb[62].mxu0 }
 0xdc3   :  { %v3116_v53 = vpop.f32.mrb[63].mxu0 }
 0xdc8   :  { %v2385_v54 = vpop.f32.mrb[64].mxu0 }
 0xdc9   :  { %v3127_v55 = vpop.f32.mrb[65].mxu0 }
 0xdca   :  { %v2388_v56 = vpop.f32.mrb[66].mxu0 }
 0xdcb   :  { %v3128_v58 = vpop.f32.mrb[67].mxu0 }
 0xded   :  { %v2336_v63 = vpop.f32.mrb[68].mxu1 }
 0xdee   :  { %v3250_v2 = vpack.i.bf16 %v2336_v63, %v2287_v3  ;;  %v3121_v61 = vpop.f32.mrb[69].mxu1 }
 0xdef   :  { %v2339_v5 = vpop.f32.mrb[70].mxu1 }
 0xdf0   :  { %3251 = vrot.lane.b32.xlu0 %v3250_v2, %s3582_s9  ;;  %v3122_v7 = vpop.f32.mrb[71].mxu1 }
 0xdf4   :  { %2487 = vrot.lane.b32.xlu0 %v4072_v9, %s3593_s6 }
 0xdf5   :  { %v2434_v60 = vpop.f32.mrb[72].mxu1 }
 0xdf6   :  { %v3255_v62 = vpack.i.bf16 %v2434_v60, %v2385_v54  ;;  %v3133_v12 = vpop.f32.mrb[73].mxu1 }
 0xdf7   :  { %v2437_v13 = vpop.f32.mrb[74].mxu1  ;;  %v3364_v12 = vld [vmem:[%s4389_s15] sm:$0x7] }
 0xdf8   :  { %3256 = vrot.lane.b32.xlu1 %v3255_v62, %s3595_s3  ;;  %v3134_v17 = vpop.f32.mrb[75].mxu1  ;;  %v2576_v62 = vsub.s32 2, %v3841_v30 }
 0xdfa   :  { %v2577_v13 = vrot.slane %v3364_v12, %v2576_v62 }
 0xe2d   :  { %v3247_v18 = vpop.permute.xlu1 %3246 }
 0xe2e   :  { %v3249_v21 = vunpack.i.h.bf16 %v3247_v18  ;;  %v3248_v22 = vunpack.i.l.bf16 %v3247_v18 }
 0xe30   :  { %v2465_v39 = vsel %vm327_vm6, %v2140_v34, %v3249_v21  ;;  %v2464_v0 = vsel %vm327_vm6, %v2091_v44, %v3248_v22 }
 0xe62   :  { %v3252_v14 = vpop.permute.xlu0 %3251 }
 0xe63   :  { %v3254_v19 = vunpack.i.h.bf16 %v3252_v14  ;;  %v3253_v10 = vunpack.i.l.bf16 %v3252_v14  ;;  %v3365_v14 = vld [vmem:[%s4390_s16] sm:$0x7]  ;;  %s3596_s16 = smov [#allocation16]  }
 0xe64   :  { %v2585_v21 = vrot.slane %v3365_v14, %v2576_v62  ;;  %s2747_s5 = sshll.u32 %s3596_s16, 4  ;;  %s2748_s5 = int_to_ptr.vmem [resolvable:$true] %s2747_s5 }
 0xe65   :  { %v2467_v24 = vsel %vm1240_vm8, %v2465_v39, %v3254_v19  ;;  %v2466_v25 = vsel %vm1240_vm8, %v2464_v0, %v3253_v10  ;;  %p3547_p9 = scmp.lt.s32.totalorder %s2748_s5, %s2748_s5 }
 0xe66   :  { %v2488_v16 = vpop.permute.xlu0 %2487 }
 0xe6a   :  { %v3257_v1 = vpop.permute.xlu1 %3256 }
 0xe6b   :  { %v3259_v23 = vunpack.i.h.bf16 %v3257_v1  ;;  %v3258_v9 = vunpack.i.l.bf16 %v3257_v1 }
 0xe6d   :  { %v2469_v26 = vsel %vm1243_vm9, %v2467_v24, %v3259_v23  ;;  %v2468_v8 = vsel %vm1243_vm9, %v2466_v25, %v3258_v9  ;;  %v3274_v23 = vld [vmem:[%s4387_s13 + $0x10] sm:$0xff]   ;;  %v3275_v9 = vld [vmem:[%s4387_s13 + $0x18] sm:$0xff]   ;;  %s3542_s13 = scalar_lea.vmem %s2748_s5, 256 }
 0xe6e   :  { %v2474_v27 = vpack.c.bf16 %v2469_v26, %v2468_v8  ;;  %p3543_p8 = scmp.ne.s32.totalorder %s2748_s5, %s3542_s13  ;;  %p3548_p10 = scmp.lt.s32.totalorder %s3542_s13, %s3542_s13 }
 0xe70   :  { %3140 = vmatmul.mubr.msk.bf16.vlgmr.msra.gmra.mrb[68].mxu0 %vm172_vm0, %v2474_v27  ;;  %p3549_p11 = por %p3548_p10, %p3547_p9 }
 0xe71   :  { %3159 = vmatprep.mubr.msk.bf16.mxu0 %vm3589_vm1, %v3588_v15  ;;  %3152 = vmatpush3.bf16.msra.mxu0 %v3272_v41 }
 0xe72   :  { %3153 = vmatprep.subr.bf16.mxu0 %v3588_v15  ;;  %p3550_p12 = pnand %p3549_p11, %p3543_p8 }
 0xe75   :  { %3154 = vmatpush3.bf16.msra.mxu0 %v3273_v40 }
 0xe76   :  { %3155 = vmatprep.subr.bf16.mxu0 %v3588_v15 }
 0xe79   :  { %3156 = vmatpush3.bf16.msra.mxu0 %v3274_v23 }
 0xe7a   :  { %3157 = vmatprep.subr.bf16.mxu0 %v3588_v15 }
 0xe7d   :  { %3158 = vmatpush3.bf16.msra.mxu0 %v3275_v9 }
 0xf43   :  { %v2527_v20 = vpop.f32.mrb[68].mxu0 }
 0xf44   :  { %v2528_v43 = vadd.f32 %v2527_v20, %v2488_v16  ;;  %v3141_v28 = vpop.f32.mrb[69].mxu0 }
 0xf45   :  { %v2530_v29 = vpop.f32.mrb[70].mxu0 }
 0xf46   :  { %v4316_v31 = vadd.f32 %v2528_v43, %v4076_v6  ;;  %v2531_v32 = vadd.f32 %v2530_v29, %v2488_v16  ;;  %v3142_v34 = vpop.f32.mrb[71].mxu0 }
 0xf48   :  { %v4319_v35 = vadd.f32 %v2531_v32, %v4080_v11  ;;  %v2536_v37 = vsel %vm172_vm0, %v4316_v31, 0.0 }
 0xf49   :  { %2537 = vadd.xlane.f32.xlu1 %v2536_v37 }
 0xf4a   :  { %v2539_v38 = vsel %vm172_vm0, %v4319_v35, 0.0 }
 0xf4b   :  { %2540 = vadd.xlane.f32.xlu0 %v2539_v38 }
 0xf5a   :  { %2690 = vrot.lane.b32.xlu1 %v2815_v48, %s3577_s1 }
 0xfd6   :  { %v2538_v44 = vpop.xlane.xlu1 %2537 }
 0xfd7   :  { %v2542_v33 = vmul.f32 0.03125, %v2538_v44 }
 0xfd8   :  { %v2541_v42 = vpop.xlane.xlu0 %2540 }
 0xfd9   :  { %v2544_v45 = vsub.f32 %v4316_v31, %v2542_v33  ;;  %v2543_v6 = vmul.f32 0.03125, %v2541_v42 }
 0xfda   :  { %v2691_v29 = vpop.permute.xlu1 %2690 }
 0xfdb   :  { %v2545_v46 = vsub.f32 %v4319_v35, %v2543_v6  ;;  %v2546_v47 = vmul.f32 %v2544_v45, %v2544_v45  ;;  %v2578_v18 = vmul.f32 %v2577_v13, %v2544_v45 }
 0xfdd   :  { %v2548_v11 = vsel %vm172_vm0, %v2546_v47, 0.0  ;;  %v2547_v49 = vmul.f32 %v2545_v46, %v2545_v46  ;;  %v2579_v22 = vmul.f32 %v2577_v13, %v2545_v46 }
 0xfde   :  { %2549 = vadd.xlane.f32.xlu0 %v2548_v11 }
 0xfdf   :  { %v2551_v50 = vsel %vm172_vm0, %v2547_v49, 0.0 }
 0xfe2   :  { %2552 = vadd.xlane.f32.xlu0 %v2551_v50 }
0x106b   :  { %v2550_v3 = vpop.xlane.xlu0 %2549 }
0x106c   :  { %v2554_v51 = vmul.f32 0.032258064, %v2550_v3 }
0x106e   :  { %3356 = vrsqrt.f32 %v2554_v51  ;;  %vm2558_vm14 = vcmp.eq.f32.partialorder %v2554_v51, inf  ;;  %v2561_v56 = vand.u32 2147483648, %v2554_v51  ;;  %vm2560_vm15 = vcmp.eq.f32.partialorder %v2554_v51, 0.0 }
0x106f   :  { %v2553_v52 = vpop.xlane.xlu0 %2552 }
0x1070   :  { %v2555_v53 = vmul.f32 0.032258064, %v2553_v52 }
0x1072   :  { %3358 = vrsqrt.f32 %v2555_v53  ;;  %vm2565_vm1 = vcmp.eq.f32.partialorder %v2555_v53, inf  ;;  %v2568_v61 = vand.u32 2147483648, %v2555_v53  ;;  %vm2567_vm2 = vcmp.eq.f32.partialorder %v2555_v53, 0.0 }
0x1078   :  { %v3357_v54 = vpop.eup %3356 }
0x1079   :  { %v2557_v55 = vmul.f32 %v3357_v54, %v2554_v51 }
0x107b   :  { %v2559_v58 = vsel %vm2558_vm14, %v2554_v51, %v2557_v55 }
0x107c   :  { %v3359_v59 = vpop.eup %3358  ;;  %v2562_v63 = vsel %vm2560_vm15, %v2561_v56, %v2559_v58 }
0x107d   :  { %v2570_v36 = vadd.f32 1e-06, %v2562_v63  ;;  %v2564_v2 = vmul.f32 %v3359_v59, %v2555_v53 }
0x107f   :  { %3360 = vrcp.f32 %v2570_v36  ;;  %v2566_v5 = vsel %vm2565_vm1, %v2555_v53, %v2564_v2 }
0x1080   :  { %v2569_v7 = vsel %vm2567_vm2, %v2568_v61, %v2566_v5 }
0x1081   :  { %v2571_v60 = vadd.f32 1e-06, %v2569_v7 }
0x1083   :  { %3362 = vrcp.f32 %v2571_v60 }
0x1089   :  { %v3361_v17 = vpop.eup %3360 }
0x108a   :  { %v2580_v19 = vmul.f32 %v3361_v17, %v2578_v18 }
0x108c   :  { %v2586_v39 = vadd.f32 %v2585_v21, %v2580_v19 }
0x108d   :  { %v3363_v10 = vpop.eup %3362 }
0x108e   :  { %v2581_v1 = vmul.f32 %v3363_v10, %v2579_v22 }
0x1090   :  { %v2587_v0 = vadd.f32 %v2585_v21, %v2581_v1 }
0x1092   :  { %v2592_v30 = vpack.c.bf16 %v2587_v0, %v2586_v39 }
0x1094   :  { %3148 = vmatmul.mubr.msk.bf16.vlgmr.msra.gmra.mrb[76].mxu1 %vm172_vm0, %v2592_v30 }
0x1167   :  { %v2648_v24 = vpop.f32.mrb[76].mxu1 }
0x1168   :  { %v2649_v25 = vadd.f32 %v2815_v48, %v2648_v24  ;;  %v3149_v26 = vpop.f32.mrb[77].mxu1 }
0x1169   :  { %v2651_v8 = vpop.f32.mrb[78].mxu1 }
0x116a   :  { %v2652_v27 = vadd.f32 %v2815_v48, %v2651_v8  ;;  %v3150_v16 = vpop.f32.mrb[79].mxu1  ;;  %v2655_v20 = vmax.f32 %v2649_v25, 0.0 }
0x116c   :  { %v2656_v43 = vmax.f32 %v2652_v27, 0.0 }
0x116e   :  { %v2665_v28 = vpack.c.bf16 %v2656_v43, %v2655_v20 }
0x1170   :  { %3160 = vmatmul.mubr.msk.bf16.vlgmr.msra.gmra.mrb[72].mxu0 %vm2693_vm3, %v2665_v28 }
0x1243   :  { %v2731_v32 = vpop.f32.mrb[72].mxu0 }
0x1244   :  { %v2732_v34 = vadd.f32 %v2731_v32, %v2691_v29  ;;  %v3161_v15 = vpop.f32.mrb[73].mxu0 }
0x1245   :  { %v2734_v37 = vpop.f32.mrb[74].mxu0 }
0x1246   :  { %v2738_v38 = vadd.f32 %v2732_v34, %v4316_v31  ;;  %v2735_v44 = vadd.f32 %v2734_v37, %v2691_v29  ;;  %v3162_v33 = vpop.f32.mrb[75].mxu0 }
0x1248   :  { %2740 = vst.msk [vmem:[#allocation16] sm:$0xff] %vm172_vm0, %v2738_v38  ;;  %v2739_v42 = vadd.f32 %v2735_v44, %v4319_v35 }
0x124a   :  { %2741 = vst.msk [vmem:[#allocation16 + $0x8] sm:$0xff] %vm172_vm0, %v2739_v42 }
0x124b   :  { %3553 = shalt.err (!%p3550_p12)
}
0x124c   :  { %s4400_s26 = sld [smem:[#allocation25_spill]] }
0x1252   :  { %s3554_s3 = scalar_lea.hbm %s4400_s26, 256 }
0x1253   :  { %p3555_p13 = scmp.ne.s32.totalorder %s4400_s26, %s3554_s3  ;;  %p3558_p0 = scmp.lt.u32.totalorder %s3554_s3, %s4400_s26 }
0x1255   :  { %p3560_p1 = pnand %p3558_p0, %p3555_p13 }
0x1257   :  { %3563 = shalt.err (!%p3560_p1)
}
0x1258   :  { %s3597_s27 = smov 128  }
0x1259   :  { %2753 = dma.vmem_to_hbm [thread:$0]  %s2748_s5, 256, %s4400_s26, [#allocation4], %s3597_s27, %s3597_s27, %s3594_s2  }
0x125a   :  { %3574 = dma.done.wait [#allocation4], 256  }
0x125b   :  { %3575 = vsyncadd [#allocation4], 4294967040 }
0x125c   :  { %2757 = vsyncpa [#allocation3], 1 }
0x125d   :  { %2758 = vsyncpa [#allocation6], 1 }
0x125e   :  { %2759 = vsyncpa [#allocation9], 1 }
0x125f   :  { %2760 = vsyncpa [#allocation12], 1 }
0x1260   :  { %2761 = vsyncpa [#allocation15], 1 }
0x1261   :  { %2762 = vsyncpa [#allocation4], 1 }

</bundles_post_ra>
